<compile_context>
chip_gen: v6e
topology: v6e:2x2x1
jax: 0.10.0
libtpu: 0.0.40
codegen_flags: <defaults>
</compile_context>

<pallas_src>
import functools

import jax
import jax.numpy as jnp
from jax import lax
from jax.experimental import pallas as pl
from jax.experimental.pallas import tpu as pltpu

CONSTANTS = {"PAD": 0, "SOS": 1, "EOS": 2}
NEG = -1e30  # finite "minus infinity" (avoids 0*inf NaNs in masked rows)


def _decoder_math(onehot_b, h, emb, wih, whh, b_ih, b_hn,
                  enc, enc_t, wcat_h, wcat_c, b_cat, wout, b_out):
    """One attention-decoder step (shared by the kernel and the JAX reference).

    Every matmul takes bf16 operands and accumulates in f32 (MXU native);
    element-wise math stays in f32.
    """
    f32, bf16 = jnp.float32, jnp.bfloat16
    H = h.shape[1]

    # embedding lookup as a one-hot matmul (one-hot built from resident tokens)
    x = jnp.dot(onehot_b, emb, preferred_element_type=f32)                  # (Wp, E)

    # GRU cell (PyTorch nn.GRUCell semantics); r/z biases pre-folded into b_ih
    gi = jnp.dot(x.astype(bf16), wih, preferred_element_type=f32) + b_ih    # (Wp, 3H)
    gh = jnp.dot(h.astype(bf16), whh, preferred_element_type=f32)           # (Wp, 3H)
    r = jax.nn.sigmoid(gi[:, 0:H] + gh[:, 0:H])
    z = jax.nn.sigmoid(gi[:, H:2 * H] + gh[:, H:2 * H])
    n = jnp.tanh(gi[:, 2 * H:3 * H] + r * (gh[:, 2 * H:3 * H] + b_hn))
    h_new = (1.0 - z) * n + z * h                                           # (Wp, H)

    # Luong dot attention; enc_t is pre-transposed once in the wrapper
    hb = h_new.astype(bf16)
    scores = jnp.dot(hb, enc_t, preferred_element_type=f32)                 # (Wp, S)
    scores = scores - jnp.max(scores, axis=1, keepdims=True)
    es = jnp.exp(scores)
    attn = es / jnp.sum(es, axis=1, keepdims=True)
    ctx = jnp.dot(attn.astype(bf16), enc, preferred_element_type=f32)       # (Wp, H)

    # concat layer + output projection + softmax (nn.Softmax(dim=1))
    cat = jnp.tanh(jnp.dot(hb, wcat_h, preferred_element_type=f32)
                   + jnp.dot(ctx.astype(bf16), wcat_c, preferred_element_type=f32)
                   + b_cat)
    logits = jnp.dot(cat.astype(bf16), wout, preferred_element_type=f32) + b_out
    logits = logits - jnp.max(logits, axis=1, keepdims=True)
    el = jnp.exp(logits)
    probs = el / jnp.sum(el, axis=1, keepdims=True)                         # (Wp, V)
    return probs, h_new


def _beam_kernel(width, sos, eos,
                 emb_ref, wih_ref, whh_ref, bih_ref, bhn_ref,
                 enc_ref, enct_ref, wch_ref, wcc_ref, bcat_ref,
                 wout_ref, bout_ref, h0_ref,
                 hist_ref, h_final_ref,
                 h_sc, tokc_sc, cumc_sc, tokr_sc, cumr_sc, parr_sc):
    f32, bf16 = jnp.float32, jnp.bfloat16
    Wp, H = h_sc.shape
    V = emb_ref.shape[0]
    LW = tokr_sc.shape[1]                      # lane-padded history width (>=128)

    row_i = lax.broadcasted_iota(jnp.int32, (Wp, 1), 0)
    row_f = row_i.astype(f32)
    lane_w = lax.broadcasted_iota(jnp.int32, (1, Wp), 1).astype(f32)   # perm lanes
    lane_p = lax.broadcasted_iota(jnp.int32, (1, LW), 1).astype(f32)   # history lanes
    lane_v = lax.broadcasted_iota(jnp.int32, (1, V), 1).astype(f32)
    col_v = lax.broadcasted_iota(jnp.int32, (Wp, V), 1).astype(f32)

    # ---- step 0: initialise the resident beam state (init_candidates) ----
    @pl.when(pl.program_id(0) == 0)
    def _init():
        h_sc[...] = h0_ref[...]
        tokc_sc[...] = jnp.where(row_f == 0.0, float(sos), float(eos)).astype(f32)
        tokr_sc[...] = jnp.where(lane_p == 0.0, float(sos), float(eos)).astype(f32)
        cumc_sc[...] = jnp.ones_like(cumc_sc)
        cumr_sc[...] = jnp.ones_like(cumr_sc)
        parr_sc[...] = jnp.zeros_like(parr_sc)

    # ---- load previous beam state ----------------------------------------
    h_old = h_sc[...]
    tokc_old = tokc_sc[...]
    cumc_old = cumc_sc[...]
    tokr_old = tokr_sc[...]
    cumr_old = cumr_sc[...]
    parr_old = parr_sc[...]

    # ---- fused decoder step for every (padded) beam row -------------------
    onehot = (col_v == tokc_old).astype(f32).astype(bf16)          # (Wp, V)
    probs, h_new = _decoder_math(
        onehot, h_old, emb_ref[...], wih_ref[...], whh_ref[...],
        bih_ref[...], bhn_ref[...], enc_ref[...], enct_ref[...],
        wch_ref[...], wcc_ref[...], bcat_ref[...], wout_ref[...], bout_ref[...])

    # ---- beam expansion: global top-`width` over cum_prob * probs ---------
    live = jnp.logical_and(row_i < width, tokc_old != float(eos))  # (Wp, 1)
    scored = jnp.where(live, cumc_old * probs, NEG)                # (Wp, V)
    n_live = jnp.sum(live.astype(f32), axis=0, keepdims=True)      # (1, 1)
    all_done = n_live < 0.5                                        # (1, 1)

    new_tokc = jnp.zeros((Wp, 1), f32)
    new_cumc = jnp.zeros((Wp, 1), f32)
    new_tokr = jnp.zeros((1, LW), f32)
    new_cumr = jnp.zeros((1, LW), f32)
    new_parr = jnp.zeros((1, LW), f32)
    perm = jnp.zeros((Wp, Wp), f32)

    for k in range(width):                       # static unroll, width is small
        row_max = jnp.max(scored, axis=1, keepdims=True)           # (Wp, 1)
        gmax = jnp.max(row_max, axis=0, keepdims=True)             # (1, 1)
        par_idx = jnp.min(jnp.where(row_max >= gmax, row_f, float(Wp)),
                          axis=0, keepdims=True)                   # (1, 1)
        par_col = (row_f == par_idx).astype(f32)                   # (Wp, 1)
        par_row = (lane_w == par_idx).astype(f32)                  # (1, Wp)
        sel_row = jnp.max(jnp.where(par_col > 0.5, scored, NEG),
                          axis=0, keepdims=True)                   # (1, V)
        tok_idx = jnp.min(jnp.where(sel_row >= gmax, lane_v, float(V)),
                          axis=1, keepdims=True)                   # (1, 1)
        tok_row = (lane_v == tok_idx).astype(f32)                  # (1, V)

        kcol = (row_f == float(k)).astype(f32)                     # (Wp, 1)
        krow = (lane_p == float(k)).astype(f32)                    # (1, LW)
        new_tokc = new_tokc + kcol * tok_idx
        new_cumc = new_cumc + kcol * gmax
        new_tokr = new_tokr + krow * tok_idx
        new_cumr = new_cumr + krow * gmax
        new_parr = new_parr + krow * par_idx
        perm = perm + kcol * par_row                               # (Wp, Wp)

        scored = jnp.where(par_col * tok_row > 0.5, NEG, scored)

    new_h = jnp.dot(perm, h_new, preferred_element_type=f32)       # exact row gather

    # freeze the candidate set if every live beam already emitted EOS
    h_next = jnp.where(all_done, h_old, new_h)
    tokc_next = jnp.where(all_done, tokc_old, new_tokc)
    cumc_next = jnp.where(all_done, cumc_old, new_cumc)
    tokr_next = jnp.where(all_done, tokr_old, new_tokr)
    cumr_next = jnp.where(all_done, cumr_old, new_cumr)
    parr_next = jnp.where(all_done, parr_old, new_parr)

    h_sc[...] = h_next
    tokc_sc[...] = tokc_next
    cumc_sc[...] = cumc_next
    tokr_sc[...] = tokr_next
    cumr_sc[...] = cumr_next
    parr_sc[...] = parr_next

    # lane-dense packed history slab: row0=token, row1=parent, row2=score
    sub8 = lax.broadcasted_iota(jnp.int32, (8, 1), 0)
    slab = (jnp.where(sub8 == 0, tokr_next, 0.0)
            + jnp.where(sub8 == 1, parr_next, 0.0)
            + jnp.where(sub8 == 2, cumr_next, 0.0))                # (8, LW)
    hist_ref[...] = slab[None]

    # final hidden states: write only on the last grid step
    @pl.when(pl.program_id(0) == pl.num_programs(0) - 1)
    def _finalize():
        h_final_ref[...] = h_next


def _resident_spec(shape):
    zeros = (0,) * len(shape)
    return pl.BlockSpec(shape, lambda t, _z=zeros: _z)


def _prepare_inputs(params, enc_outputs, encoder_hidden, width):
    """bf16 weights, folded r/z biases, split wcat, pre-transposed encoder outs."""
    f32, bf16 = jnp.float32, jnp.bfloat16
    H = encoder_hidden.shape[-1]
    Wp = max(8, ((width + 7) // 8) * 8)            # pad beams to a sublane tile
    emb = params["emb"].astype(bf16)
    wih = params["wih"].astype(bf16)
    whh = params["whh"].astype(bf16)
    b_ih = params["bih"].astype(f32)
    b_hh = params["bhh"].astype(f32)
    b_ih_fold = b_ih.at[:, :2 * H].add(b_hh[:, :2 * H])
    b_hn = b_hh[:, 2 * H:]
    wcat_h = params["wcat"][:H, :].astype(bf16)
    wcat_c = params["wcat"][H:, :].astype(bf16)
    b_cat = params["bcat"].astype(f32)
    wout = params["wout"].astype(bf16)
    b_out = params["bout"].astype(f32)
    enc = enc_outputs.astype(bf16)
    enc_t = enc_outputs.T.astype(bf16)
    h0 = jnp.broadcast_to(encoder_hidden.reshape(1, H), (Wp, H)).astype(f32)
    return (emb, wih, whh, b_ih_fold, b_hn, enc, enc_t,
            wcat_h, wcat_c, b_cat, wout, b_out, h0), Wp


def beam_search_decode(params, enc_outputs, encoder_hidden, width, max_iter):
    """init_candidates() + `max_iter` BeamSearchDecoder.forward() calls, fused.

    Returns (tok_hist, par_hist, score_hist, h_final); rows t index decode
    steps (t=0 is init), columns index beam slots (only slots < width are
    meaningful, the rest are sublane padding).
    """
    f32 = jnp.float32
    V, _ = params["emb"].shape
    H = encoder_hidden.shape[-1]
    assert 1 <= width <= V
    ins, Wp = _prepare_inputs(params, enc_outputs, encoder_hidden, width)
    T = 1 + max_iter
    LW = max(128, ((Wp + 127) // 128) * 128)       # lane-padded history width

    out_shape = (jax.ShapeDtypeStruct((T, 8, LW), f32),   # packed history slabs
                 jax.ShapeDtypeStruct((Wp, H), f32))      # final hidden states
    out_specs = (pl.BlockSpec((1, 8, LW), lambda t: (t, 0, 0)),
                 pl.BlockSpec((Wp, H), lambda t: (0, 0)))

    kernel = functools.partial(_beam_kernel, width,
                               CONSTANTS["SOS"], CONSTANTS["EOS"])
    hist, h_final = pl.pallas_call(
        kernel,
        out_shape=out_shape,
        grid=(T,),
        in_specs=[_resident_spec(a.shape) for a in ins],
        out_specs=out_specs,
        scratch_shapes=[pltpu.VMEM((Wp, H), f32),   # hidden state per beam
                        pltpu.VMEM((Wp, 1), f32),   # tokens (column layout)
                        pltpu.VMEM((Wp, 1), f32),   # cum probs (column layout)
                        pltpu.VMEM((1, LW), f32),   # tokens (row layout)
                        pltpu.VMEM((1, LW), f32),   # cum probs (row layout)
                        pltpu.VMEM((1, LW), f32)],  # parents (row layout)
        compiler_params=pltpu.CompilerParams(
            dimension_semantics=("arbitrary",)),
    )(*ins)

    tok_hist = hist[:, 0, :Wp].astype(jnp.int32)
    par_hist = hist[:, 1, :Wp].astype(jnp.int32)
    score_hist = hist[:, 2, :Wp]
    return tok_hist, par_hist, score_hist, h_final


def beam_search_reference(params, enc_outputs, encoder_hidden, width, max_iter):
    """Pure-JAX reference with the same numerics/masking (uses lax.top_k)."""
    f32, bf16 = jnp.float32, jnp.bfloat16
    ins, Wp = _prepare_inputs(params, enc_outputs, encoder_hidden, width)
    (emb, wih, whh, b_ih, b_hn, enc, enc_t,
     wcat_h, wcat_c, b_cat, wout, b_out, h0) = ins
    V = emb.shape[0]
    H = h0.shape[1]
    T = 1 + max_iter
    SOS, EOS = CONSTANTS["SOS"], CONSTANTS["EOS"]

    slot = jnp.arange(Wp)
    tok = jnp.where(slot == 0, SOS, EOS).astype(jnp.int32)
    cum = jnp.ones((Wp,), f32)
    par = jnp.zeros((Wp,), jnp.int32)
    h = h0
    tok_hist, par_hist, score_hist = [], [], []
    for _ in range(T):
        onehot = (jnp.arange(V)[None, :] == tok[:, None]).astype(f32).astype(bf16)
        probs, h_new = _decoder_math(onehot, h, emb, wih, whh, b_ih, b_hn,
                                     enc, enc_t, wcat_h, wcat_c, b_cat,
                                     wout, b_out)
        live = (slot < width) & (tok != EOS)
        scored = jnp.where(live[:, None], cum[:, None] * probs, NEG)
        best, flat_idx = jax.lax.top_k(scored.reshape(-1), width)
        parent = (flat_idx // V).astype(jnp.int32)
        token = (flat_idx % V).astype(jnp.int32)
        new_tok = jnp.zeros((Wp,), jnp.int32).at[:width].set(token)
        new_cum = jnp.zeros((Wp,), f32).at[:width].set(best)
        new_par = jnp.zeros((Wp,), jnp.int32).at[:width].set(parent)
        new_h = jnp.zeros((Wp, H), f32).at[:width].set(h_new[parent])
        done = jnp.logical_not(jnp.any(live))
        tok = jnp.where(done, tok, new_tok)
        cum = jnp.where(done, cum, new_cum)
        par = jnp.where(done, par, new_par)
        h = jnp.where(done, h, new_h)
        tok_hist.append(tok)
        par_hist.append(par)
        score_hist.append(cum)
    return (jnp.stack(tok_hist), jnp.stack(par_hist), jnp.stack(score_hist), h)


if __name__ == "__main__":
    key = jax.random.PRNGKey(0)
    WIDTH, V, E, H, S = 4, 32, 16, 32, 8
    MAX_ITER = 4
    ks = jax.random.split(key, 11)

    def init(k, shape, scale):
        return (scale * jax.random.normal(k, shape)).astype(jnp.float32)

    params = dict(
        emb=init(ks[0], (V, E), 0.5),
        wih=init(ks[1], (E, 3 * H), 0.5),
        whh=init(ks[2], (H, 3 * H), 0.5),
        bih=init(ks[3], (1, 3 * H), 0.5),
        bhh=init(ks[4], (1, 3 * H), 0.5),
        wcat=init(ks[5], (2 * H, H), 0.5),
        bcat=init(ks[6], (1, H), 0.5),
        wout=init(ks[7], (H, V), 0.5),
        bout=init(ks[8], (1, V), 0.5),
    )
    encoder_outputs = init(ks[9], (S, H), 1.0)     # encoder_outputs (src_len, H)
    encoder_hidden = init(ks[10], (1, H), 1.0)     # encoder_hidden (n_layers=1, H)

    tok_hist, par_hist, score_hist, h_final = beam_search_decode(
        params, encoder_outputs, encoder_hidden, WIDTH, MAX_ITER)
    jax.block_until_ready((tok_hist, par_hist, score_hist, h_final))

    tok_ref, par_ref, score_ref, h_ref = beam_search_reference(
        params, encoder_outputs, encoder_hidden, WIDTH, MAX_ITER)

    W = WIDTH
    assert bool(jnp.all(tok_hist[:, :W] == tok_ref[:, :W])), "token history mismatch"
    assert bool(jnp.all(par_hist[:, :W] == par_ref[:, :W])), "parent history mismatch"
    assert jnp.allclose(score_hist[:, :W], score_ref[:, :W],
                        rtol=5e-3, atol=1e-6), "beam score mismatch"
    assert jnp.allclose(h_final[:W], h_ref[:W],
                        rtol=5e-3, atol=1e-5), "hidden state mismatch"

    print("KERNEL_OK")
</pallas_src>

<mosaic_0001>
module attributes {stable_mosaic.version = 11 : i64} {
  func.func @_beam_kernel(%arg0: i32, %arg1: memref<32x16xbf16, #tpu.memory_space<vmem>>, %arg2: memref<16x96xbf16, #tpu.memory_space<vmem>>, %arg3: memref<32x96xbf16, #tpu.memory_space<vmem>>, %arg4: memref<1x96xf32, #tpu.memory_space<vmem>>, %arg5: memref<1x32xf32, #tpu.memory_space<vmem>>, %arg6: memref<8x32xbf16, #tpu.memory_space<vmem>>, %arg7: memref<32x8xbf16, #tpu.memory_space<vmem>>, %arg8: memref<32x32xbf16, #tpu.memory_space<vmem>>, %arg9: memref<32x32xbf16, #tpu.memory_space<vmem>>, %arg10: memref<1x32xf32, #tpu.memory_space<vmem>>, %arg11: memref<32x32xbf16, #tpu.memory_space<vmem>>, %arg12: memref<1x32xf32, #tpu.memory_space<vmem>>, %arg13: memref<8x32xf32, #tpu.memory_space<vmem>>, %arg14: memref<1x8x128xf32, #tpu.memory_space<vmem>>, %arg15: memref<8x32xf32, #tpu.memory_space<vmem>>, %arg16: memref<8x32xf32, #tpu.memory_space<vmem>>, %arg17: memref<8x1xf32, #tpu.memory_space<vmem>>, %arg18: memref<8x1xf32, #tpu.memory_space<vmem>>, %arg19: memref<1x128xf32, #tpu.memory_space<vmem>>, %arg20: memref<1x128xf32, #tpu.memory_space<vmem>>, %arg21: memref<1x128xf32, #tpu.memory_space<vmem>>) attributes {dimension_semantics = [#tpu.dimension_semantics<arbitrary>], iteration_bounds = array<i64: 5>, scalar_prefetch = 0 : i64, scratch_operands = 6 : i64, tpu.core_type = #tpu.core_type<tc>, window_params = [{pipeline_mode = #tpu.pipeline_mode<synchronous>, transform_indices = @transform_0, window_bounds = array<i64: 32, 16>}, {pipeline_mode = #tpu.pipeline_mode<synchronous>, transform_indices = @transform_1, window_bounds = array<i64: 16, 96>}, {pipeline_mode = #tpu.pipeline_mode<synchronous>, transform_indices = @transform_2, window_bounds = array<i64: 32, 96>}, {pipeline_mode = #tpu.pipeline_mode<synchronous>, transform_indices = @transform_3, window_bounds = array<i64: 1, 96>}, {pipeline_mode = #tpu.pipeline_mode<synchronous>, transform_indices = @transform_4, window_bounds = array<i64: 1, 32>}, {pipeline_mode = #tpu.pipeline_mode<synchronous>, transform_indices = @transform_5, window_bounds = array<i64: 8, 32>}, {pipeline_mode = #tpu.pipeline_mode<synchronous>, transform_indices = @transform_6, window_bounds = array<i64: 32, 8>}, {pipeline_mode = #tpu.pipeline_mode<synchronous>, transform_indices = @transform_7, window_bounds = array<i64: 32, 32>}, {pipeline_mode = #tpu.pipeline_mode<synchronous>, transform_indices = @transform_8, window_bounds = array<i64: 32, 32>}, {pipeline_mode = #tpu.pipeline_mode<synchronous>, transform_indices = @transform_9, window_bounds = array<i64: 1, 32>}, {pipeline_mode = #tpu.pipeline_mode<synchronous>, transform_indices = @transform_10, window_bounds = array<i64: 32, 32>}, {pipeline_mode = #tpu.pipeline_mode<synchronous>, transform_indices = @transform_11, window_bounds = array<i64: 1, 32>}, {pipeline_mode = #tpu.pipeline_mode<synchronous>, transform_indices = @transform_12, window_bounds = array<i64: 8, 32>}, {transform_indices = @transform_13, window_bounds = array<i64: 1, 8, 128>}, {pipeline_mode = #tpu.pipeline_mode<synchronous>, transform_indices = @transform_14, window_bounds = array<i64: 8, 32>}]} {
    %0 = tpu.iota {dimensions = array<i32: 0>} : vector<8x1xi32>
    %1 = arith.sitofp %0 : vector<8x1xi32> to vector<8x1xf32>
    %2 = tpu.iota {dimensions = array<i32: 1>} : vector<1x8xi32>
    %3 = arith.sitofp %2 : vector<1x8xi32> to vector<1x8xf32>
    %4 = tpu.iota {dimensions = array<i32: 1>} : vector<1x128xi32>
    %5 = arith.sitofp %4 : vector<1x128xi32> to vector<1x128xf32>
    %6 = tpu.iota {dimensions = array<i32: 1>} : vector<1x32xi32>
    %7 = arith.sitofp %6 : vector<1x32xi32> to vector<1x32xf32>
    %8 = tpu.iota {dimensions = array<i32: 1>} : vector<8x32xi32>
    %9 = arith.sitofp %8 : vector<8x32xi32> to vector<8x32xf32>
    %c0_i32 = arith.constant 0 : i32
    %10 = arith.cmpi eq, %arg0, %c0_i32 : i32
    %11 = arith.extui %10 : i1 to i32
    %c0_i32_0 = arith.constant 0 : i32
    %12 = arith.cmpi ne, %11, %c0_i32_0 : i32
    scf.if %12 {
      %c0_132 = arith.constant 0 : index
      %c0_133 = arith.constant 0 : index
      %453 = vector.load %arg13[%c0_132, %c0_133] : memref<8x32xf32, #tpu.memory_space<vmem>>, vector<8x32xf32>
      %c0_134 = arith.constant 0 : index
      %c0_135 = arith.constant 0 : index
      %454 = vector.load %arg16[%c0_134, %c0_135] : memref<8x32xf32, #tpu.memory_space<vmem>>, vector<8x32xf32>
      tpu.vector_store %arg16[%c0_134, %c0_135], %453 {strides = array<i32>} : memref<8x32xf32, #tpu.memory_space<vmem>>, vector<8x32xf32>,
      %cst_136 = arith.constant 0.000000e+00 : f32
      %455 = vector.broadcast %cst_136 : f32 to vector<8x1xf32>
      %456 = arith.cmpf oeq, %1, %455 : vector<8x1xf32>
      %cst_137 = arith.constant 1.000000e+00 : f32
      %cst_138 = arith.constant 2.000000e+00 : f32
      %457 = vector.broadcast %cst_137 : f32 to vector<8x1xf32>
      %458 = vector.broadcast %cst_138 : f32 to vector<8x1xf32>
      %459 = arith.select %456, %457, %458 : vector<8x1xi1>, vector<8x1xf32>
      %c0_139 = arith.constant 0 : index
      %c0_140 = arith.constant 0 : index
      %460 = vector.load %arg17[%c0_139, %c0_140] : memref<8x1xf32, #tpu.memory_space<vmem>>, vector<8x1xf32>
      tpu.vector_store %arg17[%c0_139, %c0_140], %459 {strides = array<i32>} : memref<8x1xf32, #tpu.memory_space<vmem>>, vector<8x1xf32>,
      %cst_141 = arith.constant 0.000000e+00 : f32
      %461 = vector.broadcast %cst_141 : f32 to vector<1x128xf32>
      %462 = arith.cmpf oeq, %5, %461 : vector<1x128xf32>
      %cst_142 = arith.constant 1.000000e+00 : f32
      %cst_143 = arith.constant 2.000000e+00 : f32
      %463 = vector.broadcast %cst_142 : f32 to vector<1x128xf32>
      %464 = vector.broadcast %cst_143 : f32 to vector<1x128xf32>
      %465 = arith.select %462, %463, %464 : vector<1x128xi1>, vector<1x128xf32>
      %c0_144 = arith.constant 0 : index
      %c0_145 = arith.constant 0 : index
      %466 = vector.load %arg19[%c0_144, %c0_145] : memref<1x128xf32, #tpu.memory_space<vmem>>, vector<1x128xf32>
      tpu.vector_store %arg19[%c0_144, %c0_145], %465 {strides = array<i32>} : memref<1x128xf32, #tpu.memory_space<vmem>>, vector<1x128xf32>,
      %cst_146 = arith.constant 1.000000e+00 : f32
      %467 = vector.broadcast %cst_146 : f32 to vector<8x1xf32>
      %c0_147 = arith.constant 0 : index
      %c0_148 = arith.constant 0 : index
      %468 = vector.load %arg18[%c0_147, %c0_148] : memref<8x1xf32, #tpu.memory_space<vmem>>, vector<8x1xf32>
      tpu.vector_store %arg18[%c0_147, %c0_148], %467 {strides = array<i32>} : memref<8x1xf32, #tpu.memory_space<vmem>>, vector<8x1xf32>,
      %cst_149 = arith.constant 1.000000e+00 : f32
      %469 = vector.broadcast %cst_149 : f32 to vector<1x128xf32>
      %c0_150 = arith.constant 0 : index
      %c0_151 = arith.constant 0 : index
      %470 = vector.load %arg20[%c0_150, %c0_151] : memref<1x128xf32, #tpu.memory_space<vmem>>, vector<1x128xf32>
      tpu.vector_store %arg20[%c0_150, %c0_151], %469 {strides = array<i32>} : memref<1x128xf32, #tpu.memory_space<vmem>>, vector<1x128xf32>,
      %cst_152 = arith.constant 0.000000e+00 : f32
      %471 = vector.broadcast %cst_152 : f32 to vector<1x128xf32>
      %c0_153 = arith.constant 0 : index
      %c0_154 = arith.constant 0 : index
      %472 = vector.load %arg21[%c0_153, %c0_154] : memref<1x128xf32, #tpu.memory_space<vmem>>, vector<1x128xf32>
      tpu.vector_store %arg21[%c0_153, %c0_154], %471 {strides = array<i32>} : memref<1x128xf32, #tpu.memory_space<vmem>>, vector<1x128xf32>,
    } else {
    }
    %c0 = arith.constant 0 : index
    %c0_1 = arith.constant 0 : index
    %13 = vector.load %arg16[%c0, %c0_1] : memref<8x32xf32, #tpu.memory_space<vmem>>, vector<8x32xf32>
    %c0_2 = arith.constant 0 : index
    %c0_3 = arith.constant 0 : index
    %14 = vector.load %arg17[%c0_2, %c0_3] : memref<8x1xf32, #tpu.memory_space<vmem>>, vector<8x1xf32>
    %c0_4 = arith.constant 0 : index
    %c0_5 = arith.constant 0 : index
    %15 = vector.load %arg18[%c0_4, %c0_5] : memref<8x1xf32, #tpu.memory_space<vmem>>, vector<8x1xf32>
    %c0_6 = arith.constant 0 : index
    %c0_7 = arith.constant 0 : index
    %16 = vector.load %arg19[%c0_6, %c0_7] : memref<1x128xf32, #tpu.memory_space<vmem>>, vector<1x128xf32>
    %c0_8 = arith.constant 0 : index
    %c0_9 = arith.constant 0 : index
    %17 = vector.load %arg20[%c0_8, %c0_9] : memref<1x128xf32, #tpu.memory_space<vmem>>, vector<1x128xf32>
    %c0_10 = arith.constant 0 : index
    %c0_11 = arith.constant 0 : index
    %18 = vector.load %arg21[%c0_10, %c0_11] : memref<1x128xf32, #tpu.memory_space<vmem>>, vector<1x128xf32>
    %19 = vector.broadcast %14 : vector<8x1xf32> to vector<8x32xf32>
    %20 = arith.cmpf oeq, %9, %19 : vector<8x32xf32>
    %21 = arith.extui %20 : vector<8x32xi1> to vector<8x32xi32>
    %22 = arith.sitofp %21 : vector<8x32xi32> to vector<8x32xf32>
    %23 = arith.truncf %22 : vector<8x32xf32> to vector<8x32xbf16>
    %c0_12 = arith.constant 0 : index
    %c0_13 = arith.constant 0 : index
    %24 = vector.load %arg1[%c0_12, %c0_13] : memref<32x16xbf16, #tpu.memory_space<vmem>>, vector<32x16xbf16>
    %c0_14 = arith.constant 0 : index
    %c0_15 = arith.constant 0 : index
    %25 = vector.load %arg2[%c0_14, %c0_15] : memref<16x96xbf16, #tpu.memory_space<vmem>>, vector<16x96xbf16>
    %c0_16 = arith.constant 0 : index
    %c0_17 = arith.constant 0 : index
    %26 = vector.load %arg3[%c0_16, %c0_17] : memref<32x96xbf16, #tpu.memory_space<vmem>>, vector<32x96xbf16>
    %c0_18 = arith.constant 0 : index
    %c0_19 = arith.constant 0 : index
    %27 = vector.load %arg4[%c0_18, %c0_19] : memref<1x96xf32, #tpu.memory_space<vmem>>, vector<1x96xf32>
    %c0_20 = arith.constant 0 : index
    %c0_21 = arith.constant 0 : index
    %28 = vector.load %arg5[%c0_20, %c0_21] : memref<1x32xf32, #tpu.memory_space<vmem>>, vector<1x32xf32>
    %c0_22 = arith.constant 0 : index
    %c0_23 = arith.constant 0 : index
    %29 = vector.load %arg6[%c0_22, %c0_23] : memref<8x32xbf16, #tpu.memory_space<vmem>>, vector<8x32xbf16>
    %c0_24 = arith.constant 0 : index
    %c0_25 = arith.constant 0 : index
    %30 = vector.load %arg7[%c0_24, %c0_25] : memref<32x8xbf16, #tpu.memory_space<vmem>>, vector<32x8xbf16>
    %c0_26 = arith.constant 0 : index
    %c0_27 = arith.constant 0 : index
    %31 = vector.load %arg8[%c0_26, %c0_27] : memref<32x32xbf16, #tpu.memory_space<vmem>>, vector<32x32xbf16>
    %c0_28 = arith.constant 0 : index
    %c0_29 = arith.constant 0 : index
    %32 = vector.load %arg9[%c0_28, %c0_29] : memref<32x32xbf16, #tpu.memory_space<vmem>>, vector<32x32xbf16>
    %c0_30 = arith.constant 0 : index
    %c0_31 = arith.constant 0 : index
    %33 = vector.load %arg10[%c0_30, %c0_31] : memref<1x32xf32, #tpu.memory_space<vmem>>, vector<1x32xf32>
    %c0_32 = arith.constant 0 : index
    %c0_33 = arith.constant 0 : index
    %34 = vector.load %arg11[%c0_32, %c0_33] : memref<32x32xbf16, #tpu.memory_space<vmem>>, vector<32x32xbf16>
    %c0_34 = arith.constant 0 : index
    %c0_35 = arith.constant 0 : index
    %35 = vector.load %arg12[%c0_34, %c0_35] : memref<1x32xf32, #tpu.memory_space<vmem>>, vector<1x32xf32>
    %cst = arith.constant dense<0.000000e+00> : vector<8x16xf32>
    %36 = tpu.matmul %23, %24, %cst {dimension_numbers = #tpu.dot_dimension_numbers<[1], [0], [0], [1], [0, 0, 1, 1], [], []>} : vector<8x32xbf16>, vector<32x16xbf16>, vector<8x16xf32> -> vector<8x16xf32>
    %37 = arith.truncf %36 : vector<8x16xf32> to vector<8x16xbf16>
    %cst_36 = arith.constant dense<0.000000e+00> : vector<8x96xf32>
    %38 = tpu.matmul %37, %25, %cst_36 {dimension_numbers = #tpu.dot_dimension_numbers<[1], [0], [0], [1], [0, 0, 1, 1], [], []>} : vector<8x16xbf16>, vector<16x96xbf16>, vector<8x96xf32> -> vector<8x96xf32>
    %39 = vector.broadcast %27 : vector<1x96xf32> to vector<8x96xf32>
    %40 = arith.addf %38, %39 : vector<8x96xf32>
    %41 = arith.truncf %13 : vector<8x32xf32> to vector<8x32xbf16>
    %cst_37 = arith.constant dense<0.000000e+00> : vector<8x96xf32>
    %42 = tpu.matmul %41, %26, %cst_37 {dimension_numbers = #tpu.dot_dimension_numbers<[1], [0], [0], [1], [0, 0, 1, 1], [], []>} : vector<8x32xbf16>, vector<32x96xbf16>, vector<8x96xf32> -> vector<8x96xf32>
    %43 = vector.extract_strided_slice %40 {offsets = [0, 0], sizes = [8, 32], strides = [1, 1]} : vector<8x96xf32> to vector<8x32xf32>
    %44 = vector.extract_strided_slice %42 {offsets = [0, 0], sizes = [8, 32], strides = [1, 1]} : vector<8x96xf32> to vector<8x32xf32>
    %45 = arith.addf %43, %44 : vector<8x32xf32>
    %46 = arith.negf %45 : vector<8x32xf32>
    %47 = math.exp %46 : vector<8x32xf32>
    %cst_38 = arith.constant 1.000000e+00 : f32
    %48 = vector.broadcast %cst_38 : f32 to vector<8x32xf32>
    %49 = arith.addf %48, %47 : vector<8x32xf32>
    %50 = arith.divf %48, %49 : vector<8x32xf32>
    %51 = vector.extract_strided_slice %40 {offsets = [0, 32], sizes = [8, 32], strides = [1, 1]} : vector<8x96xf32> to vector<8x32xf32>
    %52 = vector.extract_strided_slice %42 {offsets = [0, 32], sizes = [8, 32], strides = [1, 1]} : vector<8x96xf32> to vector<8x32xf32>
    %53 = arith.addf %51, %52 : vector<8x32xf32>
    %54 = arith.negf %53 : vector<8x32xf32>
    %55 = math.exp %54 : vector<8x32xf32>
    %cst_39 = arith.constant 1.000000e+00 : f32
    %56 = vector.broadcast %cst_39 : f32 to vector<8x32xf32>
    %57 = arith.addf %56, %55 : vector<8x32xf32>
    %58 = arith.divf %56, %57 : vector<8x32xf32>
    %59 = vector.extract_strided_slice %40 {offsets = [0, 64], sizes = [8, 32], strides = [1, 1]} : vector<8x96xf32> to vector<8x32xf32>
    %60 = vector.extract_strided_slice %42 {offsets = [0, 64], sizes = [8, 32], strides = [1, 1]} : vector<8x96xf32> to vector<8x32xf32>
    %61 = vector.broadcast %28 : vector<1x32xf32> to vector<8x32xf32>
    %62 = arith.addf %60, %61 : vector<8x32xf32>
    %63 = arith.mulf %50, %62 : vector<8x32xf32>
    %64 = arith.addf %59, %63 : vector<8x32xf32>
    %65 = math.tanh %64 : vector<8x32xf32>
    %cst_40 = arith.constant 1.000000e+00 : f32
    %66 = vector.broadcast %cst_40 : f32 to vector<8x32xf32>
    %67 = arith.subf %66, %58 : vector<8x32xf32>
    %68 = arith.mulf %67, %65 : vector<8x32xf32>
    %69 = arith.mulf %58, %13 : vector<8x32xf32>
    %70 = arith.addf %68, %69 : vector<8x32xf32>
    %71 = arith.truncf %70 : vector<8x32xf32> to vector<8x32xbf16>
    %cst_41 = arith.constant dense<0.000000e+00> : vector<8x8xf32>
    %72 = tpu.matmul %71, %30, %cst_41 {dimension_numbers = #tpu.dot_dimension_numbers<[1], [0], [0], [1], [0, 0, 1, 1], [], []>} : vector<8x32xbf16>, vector<32x8xbf16>, vector<8x8xf32> -> vector<8x8xf32>
    %cst_42 = arith.constant dense<0xFF800000> : vector<8xf32>
    %73 = vector.multi_reduction <maximumf>, %72, %cst_42 [1] : vector<8x8xf32> to vector<8xf32>
    %74 = vector.shape_cast %73 : vector<8xf32> to vector<8x1xf32>
    %75 = vector.broadcast %74 : vector<8x1xf32> to vector<8x8xf32>
    %76 = arith.subf %72, %75 : vector<8x8xf32>
    %77 = math.exp %76 : vector<8x8xf32>
    %cst_43 = arith.constant dense<0.000000e+00> : vector<8xf32>
    %78 = vector.multi_reduction <add>, %77, %cst_43 [1] : vector<8x8xf32> to vector<8xf32>
    %79 = vector.shape_cast %78 : vector<8xf32> to vector<8x1xf32>
    %80 = vector.broadcast %79 : vector<8x1xf32> to vector<8x8xf32>
    %81 = arith.divf %77, %80 : vector<8x8xf32>
    %82 = arith.truncf %81 : vector<8x8xf32> to vector<8x8xbf16>
    %cst_44 = arith.constant dense<0.000000e+00> : vector<8x32xf32>
    %83 = tpu.matmul %82, %29, %cst_44 {dimension_numbers = #tpu.dot_dimension_numbers<[1], [0], [0], [1], [0, 0, 1, 1], [], []>} : vector<8x8xbf16>, vector<8x32xbf16>, vector<8x32xf32> -> vector<8x32xf32>
    %cst_45 = arith.constant dense<0.000000e+00> : vector<8x32xf32>
    %84 = tpu.matmul %71, %31, %cst_45 {dimension_numbers = #tpu.dot_dimension_numbers<[1], [0], [0], [1], [0, 0, 1, 1], [], []>} : vector<8x32xbf16>, vector<32x32xbf16>, vector<8x32xf32> -> vector<8x32xf32>
    %85 = arith.truncf %83 : vector<8x32xf32> to vector<8x32xbf16>
    %cst_46 = arith.constant dense<0.000000e+00> : vector<8x32xf32>
    %86 = tpu.matmul %85, %32, %cst_46 {dimension_numbers = #tpu.dot_dimension_numbers<[1], [0], [0], [1], [0, 0, 1, 1], [], []>} : vector<8x32xbf16>, vector<32x32xbf16>, vector<8x32xf32> -> vector<8x32xf32>
    %87 = arith.addf %84, %86 : vector<8x32xf32>
    %88 = vector.broadcast %33 : vector<1x32xf32> to vector<8x32xf32>
    %89 = arith.addf %87, %88 : vector<8x32xf32>
    %90 = math.tanh %89 : vector<8x32xf32>
    %91 = arith.truncf %90 : vector<8x32xf32> to vector<8x32xbf16>
    %cst_47 = arith.constant dense<0.000000e+00> : vector<8x32xf32>
    %92 = tpu.matmul %91, %34, %cst_47 {dimension_numbers = #tpu.dot_dimension_numbers<[1], [0], [0], [1], [0, 0, 1, 1], [], []>} : vector<8x32xbf16>, vector<32x32xbf16>, vector<8x32xf32> -> vector<8x32xf32>
    %93 = vector.broadcast %35 : vector<1x32xf32> to vector<8x32xf32>
    %94 = arith.addf %92, %93 : vector<8x32xf32>
    %cst_48 = arith.constant dense<0xFF800000> : vector<8xf32>
    %95 = vector.multi_reduction <maximumf>, %94, %cst_48 [1] : vector<8x32xf32> to vector<8xf32>
    %96 = vector.shape_cast %95 : vector<8xf32> to vector<8x1xf32>
    %97 = vector.broadcast %96 : vector<8x1xf32> to vector<8x32xf32>
    %98 = arith.subf %94, %97 : vector<8x32xf32>
    %99 = math.exp %98 : vector<8x32xf32>
    %cst_49 = arith.constant dense<0.000000e+00> : vector<8xf32>
    %100 = vector.multi_reduction <add>, %99, %cst_49 [1] : vector<8x32xf32> to vector<8xf32>
    %101 = vector.shape_cast %100 : vector<8xf32> to vector<8x1xf32>
    %102 = vector.broadcast %101 : vector<8x1xf32> to vector<8x32xf32>
    %103 = arith.divf %99, %102 : vector<8x32xf32>
    %c4_i32 = arith.constant 4 : i32
    %104 = vector.broadcast %c4_i32 : i32 to vector<8x1xi32>
    %105 = arith.cmpi slt, %0, %104 : vector<8x1xi32>
    %cst_50 = arith.constant 2.000000e+00 : f32
    %106 = vector.broadcast %cst_50 : f32 to vector<8x1xf32>
    %107 = arith.cmpf one, %14, %106 : vector<8x1xf32>
    %108 = arith.andi %105, %107 : vector<8x1xi1>
    %109 = vector.broadcast %15 : vector<8x1xf32> to vector<8x32xf32>
    %110 = arith.mulf %109, %103 : vector<8x32xf32>
    %cst_51 = arith.constant -1.000000e+30 : f32
    %111 = vector.shape_cast %108 : vector<8x1xi1> to vector<8x1xi1>
    %112 = vector.broadcast %111 : vector<8x1xi1> to vector<8x32xi1>
    %113 = vector.broadcast %cst_51 : f32 to vector<8x32xf32>
    %114 = arith.select %112, %110, %113 : vector<8x32xi1>, vector<8x32xf32>
    %115 = arith.extui %108 : vector<8x1xi1> to vector<8x1xi32>
    %116 = arith.sitofp %115 : vector<8x1xi32> to vector<8x1xf32>
    %cst_52 = arith.constant dense<0.000000e+00> : vector<1xf32>
    %117 = vector.multi_reduction <add>, %116, %cst_52 [0] : vector<8x1xf32> to vector<1xf32>
    %118 = vector.shape_cast %117 : vector<1xf32> to vector<1x1xf32>
    %cst_53 = arith.constant 5.000000e-01 : f32
    %119 = vector.broadcast %cst_53 : f32 to vector<1x1xf32>
    %120 = arith.cmpf olt, %118, %119 : vector<1x1xf32>
    %cst_54 = arith.constant 0.000000e+00 : f32
    %121 = vector.broadcast %cst_54 : f32 to vector<8x1xf32>
    %cst_55 = arith.constant 0.000000e+00 : f32
    %122 = vector.broadcast %cst_55 : f32 to vector<8x1xf32>
    %cst_56 = arith.constant 0.000000e+00 : f32
    %123 = vector.broadcast %cst_56 : f32 to vector<1x128xf32>
    %cst_57 = arith.constant 0.000000e+00 : f32
    %124 = vector.broadcast %cst_57 : f32 to vector<1x128xf32>
    %cst_58 = arith.constant 0.000000e+00 : f32
    %125 = vector.broadcast %cst_58 : f32 to vector<1x128xf32>
    %cst_59 = arith.constant 0.000000e+00 : f32
    %126 = vector.broadcast %cst_59 : f32 to vector<8x8xf32>
    %cst_60 = arith.constant dense<0xFF800000> : vector<8xf32>
    %127 = vector.multi_reduction <maximumf>, %114, %cst_60 [1] : vector<8x32xf32> to vector<8xf32>
    %128 = vector.shape_cast %127 : vector<8xf32> to vector<8x1xf32>
    %cst_61 = arith.constant dense<0xFF800000> : vector<1xf32>
    %129 = vector.multi_reduction <maximumf>, %128, %cst_61 [0] : vector<8x1xf32> to vector<1xf32>
    %130 = vector.shape_cast %129 : vector<1xf32> to vector<1x1xf32>
    %131 = vector.broadcast %130 : vector<1x1xf32> to vector<8x1xf32>
    %132 = arith.cmpf oge, %128, %131 : vector<8x1xf32>
    %cst_62 = arith.constant 8.000000e+00 : f32
    %133 = vector.broadcast %cst_62 : f32 to vector<8x1xf32>
    %134 = arith.select %132, %1, %133 : vector<8x1xi1>, vector<8x1xf32>
    %cst_63 = arith.constant dense<0x7F800000> : vector<1xf32>
    %135 = vector.multi_reduction <minimumf>, %134, %cst_63 [0] : vector<8x1xf32> to vector<1xf32>
    %136 = vector.shape_cast %135 : vector<1xf32> to vector<1x1xf32>
    %137 = vector.broadcast %136 : vector<1x1xf32> to vector<8x1xf32>
    %138 = arith.cmpf oeq, %1, %137 : vector<8x1xf32>
    %139 = arith.extui %138 : vector<8x1xi1> to vector<8x1xi32>
    %140 = arith.sitofp %139 : vector<8x1xi32> to vector<8x1xf32>
    %141 = vector.broadcast %136 : vector<1x1xf32> to vector<1x8xf32>
    %142 = arith.cmpf oeq, %3, %141 : vector<1x8xf32>
    %143 = arith.extui %142 : vector<1x8xi1> to vector<1x8xi32>
    %144 = arith.sitofp %143 : vector<1x8xi32> to vector<1x8xf32>
    %cst_64 = arith.constant 5.000000e-01 : f32
    %145 = vector.broadcast %cst_64 : f32 to vector<8x1xf32>
    %146 = arith.cmpf ogt, %140, %145 : vector<8x1xf32>
    %cst_65 = arith.constant -1.000000e+30 : f32
    %147 = vector.shape_cast %146 : vector<8x1xi1> to vector<8x1xi1>
    %148 = vector.broadcast %147 : vector<8x1xi1> to vector<8x32xi1>
    %149 = vector.broadcast %cst_65 : f32 to vector<8x32xf32>
    %150 = arith.select %148, %114, %149 : vector<8x32xi1>, vector<8x32xf32>
    %cst_66 = arith.constant dense<0xFF800000> : vector<32xf32>
    %151 = vector.multi_reduction <maximumf>, %150, %cst_66 [0] : vector<8x32xf32> to vector<32xf32>
    %152 = vector.shape_cast %151 : vector<32xf32> to vector<1x32xf32>
    %153 = vector.broadcast %130 : vector<1x1xf32> to vector<1x32xf32>
    %154 = arith.cmpf oge, %152, %153 : vector<1x32xf32>
    %cst_67 = arith.constant 3.200000e+01 : f32
    %155 = vector.broadcast %cst_67 : f32 to vector<1x32xf32>
    %156 = arith.select %154, %7, %155 : vector<1x32xi1>, vector<1x32xf32>
    %cst_68 = arith.constant dense<0x7F800000> : vector<1xf32>
    %157 = vector.multi_reduction <minimumf>, %156, %cst_68 [1] : vector<1x32xf32> to vector<1xf32>
    %158 = vector.shape_cast %157 : vector<1xf32> to vector<1x1xf32>
    %159 = vector.broadcast %158 : vector<1x1xf32> to vector<1x32xf32>
    %160 = arith.cmpf oeq, %7, %159 : vector<1x32xf32>
    %161 = arith.extui %160 : vector<1x32xi1> to vector<1x32xi32>
    %162 = arith.sitofp %161 : vector<1x32xi32> to vector<1x32xf32>
    %cst_69 = arith.constant 0.000000e+00 : f32
    %163 = vector.broadcast %cst_69 : f32 to vector<8x1xf32>
    %164 = arith.cmpf oeq, %1, %163 : vector<8x1xf32>
    %165 = arith.extui %164 : vector<8x1xi1> to vector<8x1xi32>
    %166 = arith.sitofp %165 : vector<8x1xi32> to vector<8x1xf32>
    %cst_70 = arith.constant 0.000000e+00 : f32
    %167 = vector.broadcast %cst_70 : f32 to vector<1x128xf32>
    %168 = arith.cmpf oeq, %5, %167 : vector<1x128xf32>
    %169 = arith.extui %168 : vector<1x128xi1> to vector<1x128xi32>
    %170 = arith.sitofp %169 : vector<1x128xi32> to vector<1x128xf32>
    %171 = vector.broadcast %158 : vector<1x1xf32> to vector<8x1xf32>
    %172 = arith.mulf %166, %171 : vector<8x1xf32>
    %173 = arith.addf %121, %172 : vector<8x1xf32>
    %174 = vector.broadcast %130 : vector<1x1xf32> to vector<8x1xf32>
    %175 = arith.mulf %166, %174 : vector<8x1xf32>
    %176 = arith.addf %122, %175 : vector<8x1xf32>
    %177 = vector.broadcast %158 : vector<1x1xf32> to vector<1x128xf32>
    %178 = arith.mulf %170, %177 : vector<1x128xf32>
    %179 = arith.addf %123, %178 : vector<1x128xf32>
    %180 = vector.broadcast %130 : vector<1x1xf32> to vector<1x128xf32>
    %181 = arith.mulf %170, %180 : vector<1x128xf32>
    %182 = arith.addf %124, %181 : vector<1x128xf32>
    %183 = vector.broadcast %136 : vector<1x1xf32> to vector<1x128xf32>
    %184 = arith.mulf %170, %183 : vector<1x128xf32>
    %185 = arith.addf %125, %184 : vector<1x128xf32>
    %186 = vector.broadcast %166 : vector<8x1xf32> to vector<8x8xf32>
    %187 = vector.broadcast %144 : vector<1x8xf32> to vector<8x8xf32>
    %188 = arith.mulf %186, %187 : vector<8x8xf32>
    %189 = arith.addf %126, %188 : vector<8x8xf32>
    %190 = vector.broadcast %140 : vector<8x1xf32> to vector<8x32xf32>
    %191 = vector.broadcast %162 : vector<1x32xf32> to vector<8x32xf32>
    %192 = arith.mulf %190, %191 : vector<8x32xf32>
    %cst_71 = arith.constant 5.000000e-01 : f32
    %193 = vector.broadcast %cst_71 : f32 to vector<8x32xf32>
    %194 = arith.cmpf ogt, %192, %193 : vector<8x32xf32>
    %cst_72 = arith.constant -1.000000e+30 : f32
    %195 = vector.broadcast %cst_72 : f32 to vector<8x32xf32>
    %196 = arith.select %194, %195, %114 : vector<8x32xi1>, vector<8x32xf32>
    %cst_73 = arith.constant dense<0xFF800000> : vector<8xf32>
    %197 = vector.multi_reduction <maximumf>, %196, %cst_73 [1] : vector<8x32xf32> to vector<8xf32>
    %198 = vector.shape_cast %197 : vector<8xf32> to vector<8x1xf32>
    %cst_74 = arith.constant dense<0xFF800000> : vector<1xf32>
    %199 = vector.multi_reduction <maximumf>, %198, %cst_74 [0] : vector<8x1xf32> to vector<1xf32>
    %200 = vector.shape_cast %199 : vector<1xf32> to vector<1x1xf32>
    %201 = vector.broadcast %200 : vector<1x1xf32> to vector<8x1xf32>
    %202 = arith.cmpf oge, %198, %201 : vector<8x1xf32>
    %cst_75 = arith.constant 8.000000e+00 : f32
    %203 = vector.broadcast %cst_75 : f32 to vector<8x1xf32>
    %204 = arith.select %202, %1, %203 : vector<8x1xi1>, vector<8x1xf32>
    %cst_76 = arith.constant dense<0x7F800000> : vector<1xf32>
    %205 = vector.multi_reduction <minimumf>, %204, %cst_76 [0] : vector<8x1xf32> to vector<1xf32>
    %206 = vector.shape_cast %205 : vector<1xf32> to vector<1x1xf32>
    %207 = vector.broadcast %206 : vector<1x1xf32> to vector<8x1xf32>
    %208 = arith.cmpf oeq, %1, %207 : vector<8x1xf32>
    %209 = arith.extui %208 : vector<8x1xi1> to vector<8x1xi32>
    %210 = arith.sitofp %209 : vector<8x1xi32> to vector<8x1xf32>
    %211 = vector.broadcast %206 : vector<1x1xf32> to vector<1x8xf32>
    %212 = arith.cmpf oeq, %3, %211 : vector<1x8xf32>
    %213 = arith.extui %212 : vector<1x8xi1> to vector<1x8xi32>
    %214 = arith.sitofp %213 : vector<1x8xi32> to vector<1x8xf32>
    %cst_77 = arith.constant 5.000000e-01 : f32
    %215 = vector.broadcast %cst_77 : f32 to vector<8x1xf32>
    %216 = arith.cmpf ogt, %210, %215 : vector<8x1xf32>
    %cst_78 = arith.constant -1.000000e+30 : f32
    %217 = vector.shape_cast %216 : vector<8x1xi1> to vector<8x1xi1>
    %218 = vector.broadcast %217 : vector<8x1xi1> to vector<8x32xi1>
    %219 = vector.broadcast %cst_78 : f32 to vector<8x32xf32>
    %220 = arith.select %218, %196, %219 : vector<8x32xi1>, vector<8x32xf32>
    %cst_79 = arith.constant dense<0xFF800000> : vector<32xf32>
    %221 = vector.multi_reduction <maximumf>, %220, %cst_79 [0] : vector<8x32xf32> to vector<32xf32>
    %222 = vector.shape_cast %221 : vector<32xf32> to vector<1x32xf32>
    %223 = vector.broadcast %200 : vector<1x1xf32> to vector<1x32xf32>
    %224 = arith.cmpf oge, %222, %223 : vector<1x32xf32>
    %cst_80 = arith.constant 3.200000e+01 : f32
    %225 = vector.broadcast %cst_80 : f32 to vector<1x32xf32>
    %226 = arith.select %224, %7, %225 : vector<1x32xi1>, vector<1x32xf32>
    %cst_81 = arith.constant dense<0x7F800000> : vector<1xf32>
    %227 = vector.multi_reduction <minimumf>, %226, %cst_81 [1] : vector<1x32xf32> to vector<1xf32>
    %228 = vector.shape_cast %227 : vector<1xf32> to vector<1x1xf32>
    %229 = vector.broadcast %228 : vector<1x1xf32> to vector<1x32xf32>
    %230 = arith.cmpf oeq, %7, %229 : vector<1x32xf32>
    %231 = arith.extui %230 : vector<1x32xi1> to vector<1x32xi32>
    %232 = arith.sitofp %231 : vector<1x32xi32> to vector<1x32xf32>
    %cst_82 = arith.constant 1.000000e+00 : f32
    %233 = vector.broadcast %cst_82 : f32 to vector<8x1xf32>
    %234 = arith.cmpf oeq, %1, %233 : vector<8x1xf32>
    %235 = arith.extui %234 : vector<8x1xi1> to vector<8x1xi32>
    %236 = arith.sitofp %235 : vector<8x1xi32> to vector<8x1xf32>
    %cst_83 = arith.constant 1.000000e+00 : f32
    %237 = vector.broadcast %cst_83 : f32 to vector<1x128xf32>
    %238 = arith.cmpf oeq, %5, %237 : vector<1x128xf32>
    %239 = arith.extui %238 : vector<1x128xi1> to vector<1x128xi32>
    %240 = arith.sitofp %239 : vector<1x128xi32> to vector<1x128xf32>
    %241 = vector.broadcast %228 : vector<1x1xf32> to vector<8x1xf32>
    %242 = arith.mulf %236, %241 : vector<8x1xf32>
    %243 = arith.addf %173, %242 : vector<8x1xf32>
    %244 = vector.broadcast %200 : vector<1x1xf32> to vector<8x1xf32>
    %245 = arith.mulf %236, %244 : vector<8x1xf32>
    %246 = arith.addf %176, %245 : vector<8x1xf32>
    %247 = vector.broadcast %228 : vector<1x1xf32> to vector<1x128xf32>
    %248 = arith.mulf %240, %247 : vector<1x128xf32>
    %249 = arith.addf %179, %248 : vector<1x128xf32>
    %250 = vector.broadcast %200 : vector<1x1xf32> to vector<1x128xf32>
    %251 = arith.mulf %240, %250 : vector<1x128xf32>
    %252 = arith.addf %182, %251 : vector<1x128xf32>
    %253 = vector.broadcast %206 : vector<1x1xf32> to vector<1x128xf32>
    %254 = arith.mulf %240, %253 : vector<1x128xf32>
    %255 = arith.addf %185, %254 : vector<1x128xf32>
    %256 = vector.broadcast %236 : vector<8x1xf32> to vector<8x8xf32>
    %257 = vector.broadcast %214 : vector<1x8xf32> to vector<8x8xf32>
    %258 = arith.mulf %256, %257 : vector<8x8xf32>
    %259 = arith.addf %189, %258 : vector<8x8xf32>
    %260 = vector.broadcast %210 : vector<8x1xf32> to vector<8x32xf32>
    %261 = vector.broadcast %232 : vector<1x32xf32> to vector<8x32xf32>
    %262 = arith.mulf %260, %261 : vector<8x32xf32>
    %cst_84 = arith.constant 5.000000e-01 : f32
    %263 = vector.broadcast %cst_84 : f32 to vector<8x32xf32>
    %264 = arith.cmpf ogt, %262, %263 : vector<8x32xf32>
    %cst_85 = arith.constant -1.000000e+30 : f32
    %265 = vector.broadcast %cst_85 : f32 to vector<8x32xf32>
    %266 = arith.select %264, %265, %196 : vector<8x32xi1>, vector<8x32xf32>
    %cst_86 = arith.constant dense<0xFF800000> : vector<8xf32>
    %267 = vector.multi_reduction <maximumf>, %266, %cst_86 [1] : vector<8x32xf32> to vector<8xf32>
    %268 = vector.shape_cast %267 : vector<8xf32> to vector<8x1xf32>
    %cst_87 = arith.constant dense<0xFF800000> : vector<1xf32>
    %269 = vector.multi_reduction <maximumf>, %268, %cst_87 [0] : vector<8x1xf32> to vector<1xf32>
    %270 = vector.shape_cast %269 : vector<1xf32> to vector<1x1xf32>
    %271 = vector.broadcast %270 : vector<1x1xf32> to vector<8x1xf32>
    %272 = arith.cmpf oge, %268, %271 : vector<8x1xf32>
    %cst_88 = arith.constant 8.000000e+00 : f32
    %273 = vector.broadcast %cst_88 : f32 to vector<8x1xf32>
    %274 = arith.select %272, %1, %273 : vector<8x1xi1>, vector<8x1xf32>
    %cst_89 = arith.constant dense<0x7F800000> : vector<1xf32>
    %275 = vector.multi_reduction <minimumf>, %274, %cst_89 [0] : vector<8x1xf32> to vector<1xf32>
    %276 = vector.shape_cast %275 : vector<1xf32> to vector<1x1xf32>
    %277 = vector.broadcast %276 : vector<1x1xf32> to vector<8x1xf32>
    %278 = arith.cmpf oeq, %1, %277 : vector<8x1xf32>
    %279 = arith.extui %278 : vector<8x1xi1> to vector<8x1xi32>
    %280 = arith.sitofp %279 : vector<8x1xi32> to vector<8x1xf32>
    %281 = vector.broadcast %276 : vector<1x1xf32> to vector<1x8xf32>
    %282 = arith.cmpf oeq, %3, %281 : vector<1x8xf32>
    %283 = arith.extui %282 : vector<1x8xi1> to vector<1x8xi32>
    %284 = arith.sitofp %283 : vector<1x8xi32> to vector<1x8xf32>
    %cst_90 = arith.constant 5.000000e-01 : f32
    %285 = vector.broadcast %cst_90 : f32 to vector<8x1xf32>
    %286 = arith.cmpf ogt, %280, %285 : vector<8x1xf32>
    %cst_91 = arith.constant -1.000000e+30 : f32
    %287 = vector.shape_cast %286 : vector<8x1xi1> to vector<8x1xi1>
    %288 = vector.broadcast %287 : vector<8x1xi1> to vector<8x32xi1>
    %289 = vector.broadcast %cst_91 : f32 to vector<8x32xf32>
    %290 = arith.select %288, %266, %289 : vector<8x32xi1>, vector<8x32xf32>
    %cst_92 = arith.constant dense<0xFF800000> : vector<32xf32>
    %291 = vector.multi_reduction <maximumf>, %290, %cst_92 [0] : vector<8x32xf32> to vector<32xf32>
    %292 = vector.shape_cast %291 : vector<32xf32> to vector<1x32xf32>
    %293 = vector.broadcast %270 : vector<1x1xf32> to vector<1x32xf32>
    %294 = arith.cmpf oge, %292, %293 : vector<1x32xf32>
    %cst_93 = arith.constant 3.200000e+01 : f32
    %295 = vector.broadcast %cst_93 : f32 to vector<1x32xf32>
    %296 = arith.select %294, %7, %295 : vector<1x32xi1>, vector<1x32xf32>
    %cst_94 = arith.constant dense<0x7F800000> : vector<1xf32>
    %297 = vector.multi_reduction <minimumf>, %296, %cst_94 [1] : vector<1x32xf32> to vector<1xf32>
    %298 = vector.shape_cast %297 : vector<1xf32> to vector<1x1xf32>
    %299 = vector.broadcast %298 : vector<1x1xf32> to vector<1x32xf32>
    %300 = arith.cmpf oeq, %7, %299 : vector<1x32xf32>
    %301 = arith.extui %300 : vector<1x32xi1> to vector<1x32xi32>
    %302 = arith.sitofp %301 : vector<1x32xi32> to vector<1x32xf32>
    %cst_95 = arith.constant 2.000000e+00 : f32
    %303 = vector.broadcast %cst_95 : f32 to vector<8x1xf32>
    %304 = arith.cmpf oeq, %1, %303 : vector<8x1xf32>
    %305 = arith.extui %304 : vector<8x1xi1> to vector<8x1xi32>
    %306 = arith.sitofp %305 : vector<8x1xi32> to vector<8x1xf32>
    %cst_96 = arith.constant 2.000000e+00 : f32
    %307 = vector.broadcast %cst_96 : f32 to vector<1x128xf32>
    %308 = arith.cmpf oeq, %5, %307 : vector<1x128xf32>
    %309 = arith.extui %308 : vector<1x128xi1> to vector<1x128xi32>
    %310 = arith.sitofp %309 : vector<1x128xi32> to vector<1x128xf32>
    %311 = vector.broadcast %298 : vector<1x1xf32> to vector<8x1xf32>
    %312 = arith.mulf %306, %311 : vector<8x1xf32>
    %313 = arith.addf %243, %312 : vector<8x1xf32>
    %314 = vector.broadcast %270 : vector<1x1xf32> to vector<8x1xf32>
    %315 = arith.mulf %306, %314 : vector<8x1xf32>
    %316 = arith.addf %246, %315 : vector<8x1xf32>
    %317 = vector.broadcast %298 : vector<1x1xf32> to vector<1x128xf32>
    %318 = arith.mulf %310, %317 : vector<1x128xf32>
    %319 = arith.addf %249, %318 : vector<1x128xf32>
    %320 = vector.broadcast %270 : vector<1x1xf32> to vector<1x128xf32>
    %321 = arith.mulf %310, %320 : vector<1x128xf32>
    %322 = arith.addf %252, %321 : vector<1x128xf32>
    %323 = vector.broadcast %276 : vector<1x1xf32> to vector<1x128xf32>
    %324 = arith.mulf %310, %323 : vector<1x128xf32>
    %325 = arith.addf %255, %324 : vector<1x128xf32>
    %326 = vector.broadcast %306 : vector<8x1xf32> to vector<8x8xf32>
    %327 = vector.broadcast %284 : vector<1x8xf32> to vector<8x8xf32>
    %328 = arith.mulf %326, %327 : vector<8x8xf32>
    %329 = arith.addf %259, %328 : vector<8x8xf32>
    %330 = vector.broadcast %280 : vector<8x1xf32> to vector<8x32xf32>
    %331 = vector.broadcast %302 : vector<1x32xf32> to vector<8x32xf32>
    %332 = arith.mulf %330, %331 : vector<8x32xf32>
    %cst_97 = arith.constant 5.000000e-01 : f32
    %333 = vector.broadcast %cst_97 : f32 to vector<8x32xf32>
    %334 = arith.cmpf ogt, %332, %333 : vector<8x32xf32>
    %cst_98 = arith.constant -1.000000e+30 : f32
    %335 = vector.broadcast %cst_98 : f32 to vector<8x32xf32>
    %336 = arith.select %334, %335, %266 : vector<8x32xi1>, vector<8x32xf32>
    %cst_99 = arith.constant dense<0xFF800000> : vector<8xf32>
    %337 = vector.multi_reduction <maximumf>, %336, %cst_99 [1] : vector<8x32xf32> to vector<8xf32>
    %338 = vector.shape_cast %337 : vector<8xf32> to vector<8x1xf32>
    %cst_100 = arith.constant dense<0xFF800000> : vector<1xf32>
    %339 = vector.multi_reduction <maximumf>, %338, %cst_100 [0] : vector<8x1xf32> to vector<1xf32>
    %340 = vector.shape_cast %339 : vector<1xf32> to vector<1x1xf32>
    %341 = vector.broadcast %340 : vector<1x1xf32> to vector<8x1xf32>
    %342 = arith.cmpf oge, %338, %341 : vector<8x1xf32>
    %cst_101 = arith.constant 8.000000e+00 : f32
    %343 = vector.broadcast %cst_101 : f32 to vector<8x1xf32>
    %344 = arith.select %342, %1, %343 : vector<8x1xi1>, vector<8x1xf32>
    %cst_102 = arith.constant dense<0x7F800000> : vector<1xf32>
    %345 = vector.multi_reduction <minimumf>, %344, %cst_102 [0] : vector<8x1xf32> to vector<1xf32>
    %346 = vector.shape_cast %345 : vector<1xf32> to vector<1x1xf32>
    %347 = vector.broadcast %346 : vector<1x1xf32> to vector<8x1xf32>
    %348 = arith.cmpf oeq, %1, %347 : vector<8x1xf32>
    %349 = arith.extui %348 : vector<8x1xi1> to vector<8x1xi32>
    %350 = arith.sitofp %349 : vector<8x1xi32> to vector<8x1xf32>
    %351 = vector.broadcast %346 : vector<1x1xf32> to vector<1x8xf32>
    %352 = arith.cmpf oeq, %3, %351 : vector<1x8xf32>
    %353 = arith.extui %352 : vector<1x8xi1> to vector<1x8xi32>
    %354 = arith.sitofp %353 : vector<1x8xi32> to vector<1x8xf32>
    %cst_103 = arith.constant 5.000000e-01 : f32
    %355 = vector.broadcast %cst_103 : f32 to vector<8x1xf32>
    %356 = arith.cmpf ogt, %350, %355 : vector<8x1xf32>
    %cst_104 = arith.constant -1.000000e+30 : f32
    %357 = vector.shape_cast %356 : vector<8x1xi1> to vector<8x1xi1>
    %358 = vector.broadcast %357 : vector<8x1xi1> to vector<8x32xi1>
    %359 = vector.broadcast %cst_104 : f32 to vector<8x32xf32>
    %360 = arith.select %358, %336, %359 : vector<8x32xi1>, vector<8x32xf32>
    %cst_105 = arith.constant dense<0xFF800000> : vector<32xf32>
    %361 = vector.multi_reduction <maximumf>, %360, %cst_105 [0] : vector<8x32xf32> to vector<32xf32>
    %362 = vector.shape_cast %361 : vector<32xf32> to vector<1x32xf32>
    %363 = vector.broadcast %340 : vector<1x1xf32> to vector<1x32xf32>
    %364 = arith.cmpf oge, %362, %363 : vector<1x32xf32>
    %cst_106 = arith.constant 3.200000e+01 : f32
    %365 = vector.broadcast %cst_106 : f32 to vector<1x32xf32>
    %366 = arith.select %364, %7, %365 : vector<1x32xi1>, vector<1x32xf32>
    %cst_107 = arith.constant dense<0x7F800000> : vector<1xf32>
    %367 = vector.multi_reduction <minimumf>, %366, %cst_107 [1] : vector<1x32xf32> to vector<1xf32>
    %368 = vector.shape_cast %367 : vector<1xf32> to vector<1x1xf32>
    %cst_108 = arith.constant 3.000000e+00 : f32
    %369 = vector.broadcast %cst_108 : f32 to vector<8x1xf32>
    %370 = arith.cmpf oeq, %1, %369 : vector<8x1xf32>
    %371 = arith.extui %370 : vector<8x1xi1> to vector<8x1xi32>
    %372 = arith.sitofp %371 : vector<8x1xi32> to vector<8x1xf32>
    %cst_109 = arith.constant 3.000000e+00 : f32
    %373 = vector.broadcast %cst_109 : f32 to vector<1x128xf32>
    %374 = arith.cmpf oeq, %5, %373 : vector<1x128xf32>
    %375 = arith.extui %374 : vector<1x128xi1> to vector<1x128xi32>
    %376 = arith.sitofp %375 : vector<1x128xi32> to vector<1x128xf32>
    %377 = vector.broadcast %368 : vector<1x1xf32> to vector<8x1xf32>
    %378 = arith.mulf %372, %377 : vector<8x1xf32>
    %379 = arith.addf %313, %378 : vector<8x1xf32>
    %380 = vector.broadcast %340 : vector<1x1xf32> to vector<8x1xf32>
    %381 = arith.mulf %372, %380 : vector<8x1xf32>
    %382 = arith.addf %316, %381 : vector<8x1xf32>
    %383 = vector.broadcast %368 : vector<1x1xf32> to vector<1x128xf32>
    %384 = arith.mulf %376, %383 : vector<1x128xf32>
    %385 = arith.addf %319, %384 : vector<1x128xf32>
    %386 = vector.broadcast %340 : vector<1x1xf32> to vector<1x128xf32>
    %387 = arith.mulf %376, %386 : vector<1x128xf32>
    %388 = arith.addf %322, %387 : vector<1x128xf32>
    %389 = vector.broadcast %346 : vector<1x1xf32> to vector<1x128xf32>
    %390 = arith.mulf %376, %389 : vector<1x128xf32>
    %391 = arith.addf %325, %390 : vector<1x128xf32>
    %392 = vector.broadcast %372 : vector<8x1xf32> to vector<8x8xf32>
    %393 = vector.broadcast %354 : vector<1x8xf32> to vector<8x8xf32>
    %394 = arith.mulf %392, %393 : vector<8x8xf32>
    %395 = arith.addf %329, %394 : vector<8x8xf32>
    %cst_110 = arith.constant dense<0.000000e+00> : vector<8x32xf32>
    %396 = tpu.matmul %395, %70, %cst_110 {dimension_numbers = #tpu.dot_dimension_numbers<[1], [0], [0], [1], [0, 0, 1, 1], [], []>} : vector<8x8xf32>, vector<8x32xf32>, vector<8x32xf32> -> vector<8x32xf32>
    %397 = vector.shape_cast %120 : vector<1x1xi1> to vector<1x1xi1>
    %398 = vector.broadcast %397 : vector<1x1xi1> to vector<8x32xi1>
    %399 = arith.select %398, %13, %396 : vector<8x32xi1>, vector<8x32xf32>
    %400 = vector.shape_cast %120 : vector<1x1xi1> to vector<1x1xi1>
    %401 = vector.broadcast %400 : vector<1x1xi1> to vector<8x1xi1>
    %402 = arith.select %401, %14, %379 : vector<8x1xi1>, vector<8x1xf32>
    %403 = vector.shape_cast %120 : vector<1x1xi1> to vector<1x1xi1>
    %404 = vector.broadcast %403 : vector<1x1xi1> to vector<8x1xi1>
    %405 = arith.select %404, %15, %382 : vector<8x1xi1>, vector<8x1xf32>
    %406 = vector.shape_cast %120 : vector<1x1xi1> to vector<1x1xi1>
    %407 = vector.broadcast %406 : vector<1x1xi1> to vector<1x128xi1>
    %408 = arith.select %407, %16, %385 : vector<1x128xi1>, vector<1x128xf32>
    %409 = vector.shape_cast %120 : vector<1x1xi1> to vector<1x1xi1>
    %410 = vector.broadcast %409 : vector<1x1xi1> to vector<1x128xi1>
    %411 = arith.select %410, %17, %388 : vector<1x128xi1>, vector<1x128xf32>
    %412 = vector.shape_cast %120 : vector<1x1xi1> to vector<1x1xi1>
    %413 = vector.broadcast %412 : vector<1x1xi1> to vector<1x128xi1>
    %414 = arith.select %413, %18, %391 : vector<1x128xi1>, vector<1x128xf32>
    %c0_111 = arith.constant 0 : index
    %c0_112 = arith.constant 0 : index
    %415 = vector.load %arg16[%c0_111, %c0_112] : memref<8x32xf32, #tpu.memory_space<vmem>>, vector<8x32xf32>
    tpu.vector_store %arg16[%c0_111, %c0_112], %399 {strides = array<i32>} : memref<8x32xf32, #tpu.memory_space<vmem>>, vector<8x32xf32>,
    %c0_113 = arith.constant 0 : index
    %c0_114 = arith.constant 0 : index
    %416 = vector.load %arg17[%c0_113, %c0_114] : memref<8x1xf32, #tpu.memory_space<vmem>>, vector<8x1xf32>
    tpu.vector_store %arg17[%c0_113, %c0_114], %402 {strides = array<i32>} : memref<8x1xf32, #tpu.memory_space<vmem>>, vector<8x1xf32>,
    %c0_115 = arith.constant 0 : index
    %c0_116 = arith.constant 0 : index
    %417 = vector.load %arg18[%c0_115, %c0_116] : memref<8x1xf32, #tpu.memory_space<vmem>>, vector<8x1xf32>
    tpu.vector_store %arg18[%c0_115, %c0_116], %405 {strides = array<i32>} : memref<8x1xf32, #tpu.memory_space<vmem>>, vector<8x1xf32>,
    %c0_117 = arith.constant 0 : index
    %c0_118 = arith.constant 0 : index
    %418 = vector.load %arg19[%c0_117, %c0_118] : memref<1x128xf32, #tpu.memory_space<vmem>>, vector<1x128xf32>
    tpu.vector_store %arg19[%c0_117, %c0_118], %408 {strides = array<i32>} : memref<1x128xf32, #tpu.memory_space<vmem>>, vector<1x128xf32>,
    %c0_119 = arith.constant 0 : index
    %c0_120 = arith.constant 0 : index
    %419 = vector.load %arg20[%c0_119, %c0_120] : memref<1x128xf32, #tpu.memory_space<vmem>>, vector<1x128xf32>
    tpu.vector_store %arg20[%c0_119, %c0_120], %411 {strides = array<i32>} : memref<1x128xf32, #tpu.memory_space<vmem>>, vector<1x128xf32>,
    %c0_121 = arith.constant 0 : index
    %c0_122 = arith.constant 0 : index
    %420 = vector.load %arg21[%c0_121, %c0_122] : memref<1x128xf32, #tpu.memory_space<vmem>>, vector<1x128xf32>
    tpu.vector_store %arg21[%c0_121, %c0_122], %414 {strides = array<i32>} : memref<1x128xf32, #tpu.memory_space<vmem>>, vector<1x128xf32>,
    %421 = tpu.iota {dimensions = array<i32: 0>} : vector<8x1xi32>
    %c0_i32_123 = arith.constant 0 : i32
    %422 = vector.broadcast %c0_i32_123 : i32 to vector<8x1xi32>
    %423 = arith.cmpi eq, %421, %422 : vector<8x1xi32>
    %cst_124 = arith.constant 0.000000e+00 : f32
    %424 = vector.shape_cast %423 : vector<8x1xi1> to vector<8x1xi1>
    %425 = vector.broadcast %424 : vector<8x1xi1> to vector<8x128xi1>
    %426 = vector.shape_cast %408 : vector<1x128xf32> to vector<1x128xf32>
    %427 = vector.broadcast %426 : vector<1x128xf32> to vector<8x128xf32>
    %428 = vector.broadcast %cst_124 : f32 to vector<8x128xf32>
    %429 = arith.select %425, %427, %428 : vector<8x128xi1>, vector<8x128xf32>
    %c1_i32 = arith.constant 1 : i32
    %430 = vector.broadcast %c1_i32 : i32 to vector<8x1xi32>
    %431 = arith.cmpi eq, %421, %430 : vector<8x1xi32>
    %cst_125 = arith.constant 0.000000e+00 : f32
    %432 = vector.shape_cast %431 : vector<8x1xi1> to vector<8x1xi1>
    %433 = vector.broadcast %432 : vector<8x1xi1> to vector<8x128xi1>
    %434 = vector.shape_cast %414 : vector<1x128xf32> to vector<1x128xf32>
    %435 = vector.broadcast %434 : vector<1x128xf32> to vector<8x128xf32>
    %436 = vector.broadcast %cst_125 : f32 to vector<8x128xf32>
    %437 = arith.select %433, %435, %436 : vector<8x128xi1>, vector<8x128xf32>
    %438 = arith.addf %429, %437 : vector<8x128xf32>
    %c2_i32 = arith.constant 2 : i32
    %439 = vector.broadcast %c2_i32 : i32 to vector<8x1xi32>
    %440 = arith.cmpi eq, %421, %439 : vector<8x1xi32>
    %cst_126 = arith.constant 0.000000e+00 : f32
    %441 = vector.shape_cast %440 : vector<8x1xi1> to vector<8x1xi1>
    %442 = vector.broadcast %441 : vector<8x1xi1> to vector<8x128xi1>
    %443 = vector.shape_cast %411 : vector<1x128xf32> to vector<1x128xf32>
    %444 = vector.broadcast %443 : vector<1x128xf32> to vector<8x128xf32>
    %445 = vector.broadcast %cst_126 : f32 to vector<8x128xf32>
    %446 = arith.select %442, %444, %445 : vector<8x128xi1>, vector<8x128xf32>
    %447 = arith.addf %438, %446 : vector<8x128xf32>
    %448 = vector.shape_cast %447 : vector<8x128xf32> to vector<1x8x128xf32>
    %c0_127 = arith.constant 0 : index
    %c0_128 = arith.constant 0 : index
    %c0_129 = arith.constant 0 : index
    %449 = vector.load %arg14[%c0_127, %c0_128, %c0_129] : memref<1x8x128xf32, #tpu.memory_space<vmem>>, vector<1x8x128xf32>
    tpu.vector_store %arg14[%c0_127, %c0_128, %c0_129], %448 {strides = array<i32>} : memref<1x8x128xf32, #tpu.memory_space<vmem>>, vector<1x8x128xf32>,
    %c4_i32_130 = arith.constant 4 : i32
    %450 = arith.cmpi eq, %arg0, %c4_i32_130 : i32
    %451 = arith.extui %450 : i1 to i32
    %c0_i32_131 = arith.constant 0 : i32
    %452 = arith.cmpi ne, %451, %c0_i32_131 : i32
    scf.if %452 {
      %c0_132 = arith.constant 0 : index
      %c0_133 = arith.constant 0 : index
      %453 = vector.load %arg15[%c0_132, %c0_133] : memref<8x32xf32, #tpu.memory_space<vmem>>, vector<8x32xf32>
      tpu.vector_store %arg15[%c0_132, %c0_133], %399 {strides = array<i32>} : memref<8x32xf32, #tpu.memory_space<vmem>>, vector<8x32xf32>,
    } else {
    }
    return
  }
  func.func @transform_0(%arg0: i32) -> (i32, i32) {
    %c0_i32 = arith.constant 0 : i32
    %c0_i32_0 = arith.constant 0 : i32
    %c0_i32_1 = arith.constant 0 : i32
    return %c0_i32, %c0_i32_0 : i32, i32
  }
  func.func @transform_1(%arg0: i32) -> (i32, i32) {
    %c0_i32 = arith.constant 0 : i32
    %c0_i32_0 = arith.constant 0 : i32
    %c0_i32_1 = arith.constant 0 : i32
    return %c0_i32, %c0_i32_0 : i32, i32
  }
  func.func @transform_2(%arg0: i32) -> (i32, i32) {
    %c0_i32 = arith.constant 0 : i32
    %c0_i32_0 = arith.constant 0 : i32
    %c0_i32_1 = arith.constant 0 : i32
    return %c0_i32, %c0_i32_0 : i32, i32
  }
  func.func @transform_3(%arg0: i32) -> (i32, i32) {
    %c0_i32 = arith.constant 0 : i32
    %c0_i32_0 = arith.constant 0 : i32
    %c0_i32_1 = arith.constant 0 : i32
    return %c0_i32, %c0_i32_0 : i32, i32
  }
  func.func @transform_4(%arg0: i32) -> (i32, i32) {
    %c0_i32 = arith.constant 0 : i32
    %c0_i32_0 = arith.constant 0 : i32
    %c0_i32_1 = arith.constant 0 : i32
    return %c0_i32, %c0_i32_0 : i32, i32
  }
  func.func @transform_5(%arg0: i32) -> (i32, i32) {
    %c0_i32 = arith.constant 0 : i32
    %c0_i32_0 = arith.constant 0 : i32
    %c0_i32_1 = arith.constant 0 : i32
    return %c0_i32, %c0_i32_0 : i32, i32
  }
  func.func @transform_6(%arg0: i32) -> (i32, i32) {
    %c0_i32 = arith.constant 0 : i32
    %c0_i32_0 = arith.constant 0 : i32
    %c0_i32_1 = arith.constant 0 : i32
    return %c0_i32, %c0_i32_0 : i32, i32
  }
  func.func @transform_7(%arg0: i32) -> (i32, i32) {
    %c0_i32 = arith.constant 0 : i32
    %c0_i32_0 = arith.constant 0 : i32
    %c0_i32_1 = arith.constant 0 : i32
    return %c0_i32, %c0_i32_0 : i32, i32
  }
  func.func @transform_8(%arg0: i32) -> (i32, i32) {
    %c0_i32 = arith.constant 0 : i32
    %c0_i32_0 = arith.constant 0 : i32
    %c0_i32_1 = arith.constant 0 : i32
    return %c0_i32, %c0_i32_0 : i32, i32
  }
  func.func @transform_9(%arg0: i32) -> (i32, i32) {
    %c0_i32 = arith.constant 0 : i32
    %c0_i32_0 = arith.constant 0 : i32
    %c0_i32_1 = arith.constant 0 : i32
    return %c0_i32, %c0_i32_0 : i32, i32
  }
  func.func @transform_10(%arg0: i32) -> (i32, i32) {
    %c0_i32 = arith.constant 0 : i32
    %c0_i32_0 = arith.constant 0 : i32
    %c0_i32_1 = arith.constant 0 : i32
    return %c0_i32, %c0_i32_0 : i32, i32
  }
  func.func @transform_11(%arg0: i32) -> (i32, i32) {
    %c0_i32 = arith.constant 0 : i32
    %c0_i32_0 = arith.constant 0 : i32
    %c0_i32_1 = arith.constant 0 : i32
    return %c0_i32, %c0_i32_0 : i32, i32
  }
  func.func @transform_12(%arg0: i32) -> (i32, i32) {
    %c0_i32 = arith.constant 0 : i32
    %c0_i32_0 = arith.constant 0 : i32
    %c0_i32_1 = arith.constant 0 : i32
    return %c0_i32, %c0_i32_0 : i32, i32
  }
  func.func @transform_13(%arg0: i32) -> (i32, i32, i32) {
    %c0_i32 = arith.constant 0 : i32
    %c0_i32_0 = arith.constant 0 : i32
    %c0_i32_1 = arith.constant 0 : i32
    return %arg0, %c0_i32, %c0_i32_0 : i32, i32, i32
  }
  func.func @transform_14(%arg0: i32) -> (i32, i32) {
    %c0_i32 = arith.constant 0 : i32
    %c0_i32_0 = arith.constant 0 : i32
    %c0_i32_1 = arith.constant 0 : i32
    return %c0_i32, %c0_i32_0 : i32, i32
  }
}

</mosaic_0001>

<bundles_post_ra>
// kernel: tpu_custom_call.1
= control target key start
LH: loop header
LB: loop body
LE: loop exit
PB: predicated region body
PF: predicated region fallthrough
CT: control target
= control target key end

     0   :  { %s2715_s0 = inlined_call_operand.vmem [shape: bf16[32,16], index: 0, kind: input, shape index: {}]   ;;  %s2716_s1 = inlined_call_operand.hbm [shape: bf16[16,96], index: 1, kind: input, shape index: {}]   ;;  %s2717_s2 = inlined_call_operand.vmem [shape: bf16[32,96], index: 2, kind: input, shape index: {}]   ;;  %s2718_s3 = inlined_call_operand.hbm [shape: f32[1,96], index: 3, kind: input, shape index: {}]   ;;  %s2719_s4 = inlined_call_operand.hbm [shape: f32[1,32], index: 4, kind: input, shape index: {}]   ;;  %s2720_s5 = inlined_call_operand.hbm [shape: bf16[8,32], index: 5, kind: input, shape index: {}]   ;;  %s2721_s6 = inlined_call_operand.vmem [shape: bf16[32,8], index: 6, kind: input, shape index: {}]   ;;  %s2722_s7 = inlined_call_operand.vmem [shape: bf16[32,32], index: 7, kind: input, shape index: {}]   ;;  %s2723_s8 = inlined_call_operand.vmem [shape: bf16[32,32], index: 8, kind: input, shape index: {}]   ;;  %s2724_s9 = inlined_call_operand.vmem [shape: f32[1,32], index: 9, kind: input, shape index: {}]   ;;  %s2725_s10 = inlined_call_operand.hbm [shape: bf16[32,32], index: 10, kind: input, shape index: {}]   ;;  %s2726_s11 = inlined_call_operand.vmem [shape: f32[1,32], index: 11, kind: input, shape index: {}]   ;;  %s2727_s12 = inlined_call_operand.vmem [shape: f32[8,32], index: 12, kind: input, shape index: {}]   ;;  %s2728_s13 = inlined_call_operand.hbm [shape: f32[5,8,128], index: 13, kind: output, shape index: {0}]   ;;  %s2729_s14 = inlined_call_operand.hbm [shape: f32[8,32], index: 14, kind: output, shape index: {1}]  }
   0x1   :  { %2739 = sst [smem:[#allocation30_spill]] %s2718_s3 }
   0x2   :  { %2740 = sst [smem:[#allocation31_spill]] %s2720_s5 }
   0x3   :  { %20 = vsyncpa [#allocation9], 0 }
   0x4   :  { %21 = vsyncpa [#allocation12], 0 }
   0x5   :  { %22 = vsyncpa [#allocation15], 0 }
   0x6   :  { %23 = vsyncpa [#allocation10], 0 }
   0x7   :  { %25 = vsyncpa [#allocation10 + $0x1], 0 }
   0x8   :  { %26 = vsyncpa [#allocation19], 0  ;;  %s2258_s29 = smov 0   ;;  %s2260_s30 = smov 0  }
   0x9   :  { %s2262_s15 = smov 0   ;;  %s2264_s16 = smov 0  }
   0xa LB: > { %2741 = sst [smem:[#allocation25_spill]] %s2151_s29  ;;  %s2279_s17 = sadd.s32 4294967295, %s2163_s16   ;;  %s2163_s16 = sphi %s2264_s16, %s2771_s16   ;;  %s2159_s15 = sphi %s2262_s15, %s2773_s15   ;;  %s2155_s30 = sphi %s2260_s30, %s2775_s30   ;;  %s2151_s29 = sphi %s2258_s29, %s2774_s29  }
   0xb   : > { %2742 = sst [smem:[#allocation26_spill]] %s2159_s15  ;;  %s1635_s18 = sadd.s32 4294967294, %s2163_s16  }
   0xc   : > { %s2283_s19 = sadd.s32 1, %s2163_s16   ;;  %s312_s20 = sadd.s32 1, %s2159_s15 }
   0xd   : > { %2743 = sst [smem:[#allocation27_spill]] %s2283_s19  ;;  %s309_s21 = ssub.s32 %s2163_s16, %s2283_s19 }
   0xe   : > { %p322_p0 = scmp.ne.s32.totalorder %s2159_s15, %s2155_s30  ;;  %p310_p1 = scmp.eq.s32.totalorder %s309_s21, 0 }
   0xf   : > { %p2731_p2 = scmp.eq.s32.totalorder %s2279_s17, 4  ;;  %p328_p3 = scmp.ne.s32.totalorder %s2155_s30, %s2151_s29 }
  0x10   : > { %p329_p4 = scmp.eq.s32.totalorder %s1635_s18, 4  ;;  %p1636_p7 = scmp.ge.s32.totalorder %s2163_s16, 1 }
  0x11   : > { %s2294_s22 = scalar_select %p310_p1, %s2159_s15, %s312_s20  }
  0x12   : > { %p2298_p5 = por %p2731_p2, %p322_p0  ;;  %p2302_p6 = por %p329_p4, %p328_p3 }
  0x13   : > { %2744 = sst [smem:[#allocation28_spill]] %s2294_s22  ;;  %p357_p8 = scmp.lt.s32.totalorder %s2163_s16, 6 }
  0x14   : > { %s2745_s23 = scalar_select %p2298_p5, 1, 0 }
  0x15   : > { %s2746_s24 = scalar_select %p2302_p6, 1, 0 }
  0x16   : > { %p2735_p10 = scmp.eq.s32.totalorder %s2279_s17, 0  ;;  %p2310_p11 = pnand %p1636_p7, %p357_p8 }
  0x17   : > { %2747 = sst [smem:[#allocation29_spill]] %s2746_s24  ;;  %s2165_s26 = smov [#allocation11]  }
  0x18   : > { %s2748_s25 = scalar_select %p2310_p11, 1, 0 }
  0x19   : > { %s389_s27 = sshll.u32 %s2165_s26, 4  ;;  %p1820_p12 = pneg %p2310_p11  ;;  %s390_s27 = int_to_ptr.vmem [resolvable:$true] %s389_s27 }
  0x1a   : > { %s2166_s28 = smov [#allocation14]   ;;  %s2167_s21 = smov [#allocation8]  }
  0x1b   : > { %s411_s18 = sshll.u32 %s2166_s28, 4  ;;  %p2318_p13 = pnand %p2735_p10, %p1820_p12  ;;  %s412_s18 = int_to_ptr.vmem [resolvable:$true] %s411_s18 }
  0x1c   : > { %s372_s22 = sshll.u32 %s2167_s21, 4  ;;  %s1944_s26 = scalar_lea.vmem %s390_s27, 16  ;;  %s2322_s22 = int_to_ptr.vmem [resolvable:$true] %s372_s22 }
  0x1d   : > { %p2326_p0 = pneg %p2318_p13  ;;  %p1945_p1 = scmp.ne.s32.totalorder %s390_s27, %s1944_s26 }
  0x1e   : > { %s1951_s28 = scalar_lea.vmem %s390_s27, 32  ;;  %p1952_p7 = scmp.lt.s32.totalorder %s390_s27, %s390_s27 }
  0x1f   : > { %p1947_p3 = pnand %p1945_p1, %p2326_p0  ;;  %p1953_p8 = scmp.lt.s32.totalorder %s1951_s28, %s1944_s26 }
  0x21   : > { %p1948_p4 = pneg %p1947_p3  ;;  %p1954_p12 = por %p1953_p8, %p1952_p7 }
  0x23   : > { %p1955_p2 = pnand %p1954_p12, %p1948_p4 }
  0x25   : > { %1958 = shalt.err (!%p1955_p2)
}
  0x26   : > { %s2751_s3 = sld [smem:[#allocation30_spill]]  ;;  %s1970_s24 = scalar_lea.vmem %s412_s18, 64 }
  0x27   : > { %p1971_p9 = scmp.ne.s32.totalorder %s412_s18, %s1970_s24  ;;  %p1978_p1 = scmp.lt.s32.totalorder %s412_s18, %s412_s18 }
  0x28   : > { %p1979_p3 = scmp.lt.s32.totalorder %s1970_s24, %s1970_s24 }
  0x29   : > { %p1973_p10 = pnand %p1971_p9, %p2326_p0 }
  0x2a   : > { %p1980_p5 = por %p1979_p3, %p1978_p1 }
  0x2b   : > { %p1974_p6 = pneg %p1973_p10 }
  0x2c   : > { %1826 = dma.hbm_to_vmem [thread:$0]  (!%p2318_p13), %s2751_s3, 16, %s390_s27, [#allocation12]  }
  0x2d   : > { %p1981_p11 = pnand %p1980_p5, %p1974_p6 }
  0x2f   : > { %1984 = shalt.err (!%p1981_p11)
}
  0x30   : > { %s2752_s5 = sld [smem:[#allocation31_spill]]  ;;  %s1996_s19 = scalar_lea.vmem %s2322_s22, 128 }
  0x31   : > { %p1997_p2 = scmp.ne.s32.totalorder %s2322_s22, %s1996_s19  ;;  %p2004_p4 = scmp.lt.s32.totalorder %s2322_s22, %s2322_s22 }
  0x32   : > { %p2005_p7 = scmp.lt.s32.totalorder %s1996_s19, %s1996_s19 }
  0x33   : > { %p1999_p9 = pnand %p1997_p2, %p2326_p0 }
  0x34   : > { %p2006_p5 = por %p2005_p7, %p2004_p4 }
  0x35   : > { %p2000_p10 = pneg %p1999_p9 }
  0x36   : > { %1832 = dma.hbm_to_vmem [thread:$0]  (!%p2318_p13), %s2752_s5, 64, %s412_s18, [#allocation15]  }
  0x37   : > { %p2007_p6 = pnand %p2006_p5, %p2000_p10 }
  0x39   : > { %2010 = shalt.err (!%p2007_p6)
}
  0x3a   : > { %s2168_s24 = smov 64   ;;  %s2169_s27 = smov 4  }
  0x3b   : > { %1823 = dma.hbm_to_vmem [thread:$0]  (!%p2318_p13), %s2716_s1, 128, %s2322_s22, [#allocation9], %s2168_s24, %s2168_s24, %s2169_s27  }
  0x3c   : > { %s2170_s26 = smov [#allocation13]   ;;  %s2171_s19 = smov [#allocation16]  }
  0x3d   : > { %s400_s28 = sshll.u32 %s2170_s26, 4  ;;  %s433_s3 = sshll.u32 %s2171_s19, 4  ;;  %s401_s28 = int_to_ptr.vmem [resolvable:$true] %s400_s28  ;;  %s434_s3 = int_to_ptr.vmem [resolvable:$true] %s433_s3 }
  0x3e   : > { %s2022_s5 = scalar_lea.vmem %s401_s28, 16  ;;  %s2029_s29 = scalar_lea.vmem %s401_s28, 32 }
  0x3f   : > { %p2023_p11 = scmp.ne.s32.totalorder %s401_s28, %s2022_s5  ;;  %p2030_p1 = scmp.lt.s32.totalorder %s401_s28, %s401_s28 }
  0x40   : > { %p2031_p3 = scmp.lt.s32.totalorder %s2029_s29, %s2022_s5 }
  0x41   : > { %p2025_p8 = pnand %p2023_p11, %p2326_p0 }
  0x42   : > { %p2032_p2 = por %p2031_p3, %p2030_p1 }
  0x43   : > { %p2026_p12 = pneg %p2025_p8 }
  0x45   : > { %p2033_p9 = pnand %p2032_p2, %p2026_p12 }
  0x47   : > { %2036 = shalt.err (!%p2033_p9)
}
  0x48   : > { %1829 = dma.hbm_to_vmem [thread:$0]  (!%p2318_p13), %s2719_s4, 16, %s401_s28, [#allocation12]  }
  0x49   : > { %s2048_s21 = scalar_lea.vmem %s434_s3, 256  ;;  %p2056_p5 = scmp.lt.s32.totalorder %s434_s3, %s434_s3 }
  0x4a   : > { %p2049_p10 = scmp.ne.s32.totalorder %s434_s3, %s2048_s21  ;;  %p2057_p6 = scmp.lt.s32.totalorder %s2048_s21, %s2048_s21 }
  0x4c   : > { %p2051_p4 = pnand %p2049_p10, %p2326_p0  ;;  %p2058_p11 = por %p2057_p6, %p2056_p5 }
  0x4e   : > { %p2052_p7 = pneg %p2051_p4 }
  0x50   : > { %p2059_p8 = pnand %p2058_p11, %p2052_p7 }
  0x52   : > { %2062 = shalt.err (!%p2059_p8)
}
  0x53   : > { %1835 = dma.hbm_to_vmem [thread:$0]  (!%p2318_p13), %s2725_s10, 256, %s434_s3, [#allocation15], %s2168_s24, %s2168_s24, %s2169_s27  }
  0x54   : > { %p2753_p12 = scmp.ne.s32.totalorder %s2748_s25, 0 }
  0x55   : > { %p2754_p0 = scmp.eq.s32.totalorder (!%p2753_p12), %s2279_s17, 0 }
  0x56   : > { %455 = sbr.rel (%p2753_p12) target bundleno = 3948 (0xf6c), region = 72 }
  0x5b   : > { %2130 = dma.done.wait (%p2754_p0), [#allocation9], 128   ;;  %p2755_p1 = pmov %p2754_p0 }
  0x5c   : > { %p2756_p3 = pmov %p2754_p0 }
  0x5d   : > { %2132 = vsyncadd (%p2755_p1), [#allocation9], 4294967168 }
  0x5e   : > { %2134 = dma.done.wait (%p2756_p3), [#allocation12], 32   ;;  %p2757_p2 = pmov %p2754_p0 }
  0x5f   : > { %p2758_p9 = pmov %p2754_p0 }
  0x60   : > { %2136 = vsyncadd (%p2757_p2), [#allocation12], 4294967264 }
  0x61   : > { %2138 = dma.done.wait (%p2758_p9), [#allocation15], 320   ;;  %p2759_p13 = pmov %p2754_p0 }
  0x62   : > { %s507_s3 = sand.u32 1, %s2155_s30   ;;  %v513_v0 = vlaneseq  ;;  %p2760_p10 = scmp.ne.s32.totalorder %s2279_s17, 0 }
  0x63   : > { %2140 = vsyncadd (%p2759_p13), [#allocation15], 4294966976  ;;  %s2393_s15 = sshll.u32 %s507_s3, 3 }
  0x64   : > { %v2395_v1 = vshrl.u32 %v513_v0, 7  ;;  %v517_v2 = vand.u32 127, %v513_v0  ;;  %s509_s25 = scalar_lea.vmem [#allocation17], %s2393_s15  ;;  %522 = sbr.rel (%p2760_p10) target bundleno = 110 (0x6e), region = 96 }
  0x66   : > { %v2398_v3 = vcvt.s32.f32 %v2395_v1  ;;  %v2400_v4 = vcvt.s32.f32 %v517_v2 }
  0x69   : > { %v523_v5 = vld [vmem:[%s2727_s12] sm:$0xff]  ;;  %vm524_vm0 = vcmask 261120   ;;  %vm526_vm1 = vcmp.eq.f32.partialorder %v2398_v3, 0.0  ;;  %vm528_vm2 = vcmask 7168   ;;  %v2172_v6 = vmov 2.0  }
  0x6a   : > { %525 = vst.msk [vmem:[#allocation2] sm:$0xff] %vm524_vm0, %v523_v5  ;;  %v527_v7 = vsel %vm526_vm1, 1.0, %v2172_v6  ;;  %vm530_vm3 = vcmp.eq.f32.partialorder %v2400_v4, 0.0  ;;  %v2173_v9 = vmov 1.0   ;;  %v2174_v10 = vmov 0.0  }
  0x6b   : > { %529 = vst.msk [vmem:[#allocation3] sm:$0xff] %vm528_vm2, %v527_v7  ;;  %v531_v8 = vsel %vm530_vm3, 1.0, %v2172_v6  ;;  %533 = vst.msk [vmem:[#allocation4] sm:$0xff] %vm528_vm2, %v2173_v9 }
  0x6c   : > { %534 = vst [vmem:[#allocation6] sm:$0x1] %v2173_v9  ;;  %535 = vst [vmem:[#allocation7] sm:$0x1] %v2174_v10 }
  0x6d   : > { %532 = vst [vmem:[#allocation5] sm:$0x1] %v531_v8 }
  0x6e PF: > { %v1904_v12 = vld [vmem:[%s2715_s0 + $0x8] sm:$0xff]   ;;  %v2175_v13 = vmov 0   ;;  %v2176_v14 = vmov 0.0   ;;  %v1905_v15 = vld [vmem:[%s2715_s0] sm:$0xff]   ;;  %vm2177_vm4 = vmmov 0   ;;  %vm594_vm6 = vcmask 261120  }
  0x6f   : > { %1902 = vset.pattern.permute.xlu0 %v2175_v13  ;;  %1729 = vmatprep.subr.bf16.mxu0 %v2176_v14  ;;  %v1906_v16 = vld [vmem:[#allocation8] sm:$0xff]   ;;  %v1661_v20 = vld [vmem:[#allocation13] ss:$0 sm:$0xff]  ;;  %s2178_s18 = smov 64   ;;  %vm651_vm7 = vcmask 130048   ;;  %v1907_v22 = vld [vmem:[%s2717_s2 + $0x8] sm:$0xff]  }
  0x70   : > { %1730 = vmatpush3.bf16.msra.mxu0 %v1904_v12  ;;  %1733 = vmatprep.mubr.msk.bf16.mxu0 %vm2177_vm4, %v2176_v14  ;;  %v1908_v26 = vld [vmem:[%s2717_s2] sm:$0xff]   ;;  %s2179_s20 = smov 32   ;;  %v1909_v51 = vld [vmem:[%s2721_s6 + $0x8] sm:$0xff]   ;;  %s2180_s19 = smov 96   ;;  %vm849_vm8 = vcmask 64512   ;;  %vm865_vm9 = vcmask 1043456  }
  0x71   : > { %1731 = vmatprep.subr.bf16.mxu0 %v2176_v14  ;;  %1737 = vmatprep.subr.bf16.mxu1 %v2176_v14  ;;  %v2444_v27 = vld [vmem:[#allocation2] sm:$0xff]  ;;  %vm1098_vm10 = vcmp.lt.s32.totalorder %v2395_v1, 4  ;;  %p1698_p4 = scmp.ne.s32.totalorder %s2279_s17, 4 }
  0x72   : > { %v2410_v11 = vld [vmem:[#allocation3] sm:$0xff]  ;;  %1739 = vmatprep.mubr.msk.bf16.mxu1 %vm2177_vm4, %v2176_v14  ;;  %1738 = vmatpush3.bf16.msra.mxu1 %v1906_v16  ;;  %v695_v29 = vpack.c.bf16 %v2444_v27, %v2444_v27  ;;  %v1654_v40 = vld [vmem:[#allocation11] ss:$0 sm:$0xff] }
  0x73   : > { %544 = vperm.xlu0 %1902, %v2410_v11   ;;  %1903 = vset.pattern.permute.xlu1 %v2175_v13  ;;  %v1910_v52 = vld [vmem:[%s2721_s6] sm:$0xff]   ;;  %v1913_v16 = vld [vmem:[%s2723_s8 + $0x8] sm:$0xff]   ;;  %vm1099_vm11 = vcmp.ne.f32.partialorder %v2410_v11, 2.0 }
  0x74   : > { %1732 = vmatpush3.bf16.msra.mxu0 %v1905_v15  ;;  %1743 = vmatprep.subr.bf16.mxu1 %v2176_v14  ;;  %v563_v12 = vld [vmem:[#allocation14] sm:$0xf]  ;;  %vm2516_vm12 = vmand %vm1098_vm10, %vm1099_vm11 }
  0x75   : > { %1751 = vmatprep.subr.bf16.mxu0 %v2176_v14  ;;  %v867_v15 = vsel %vm865_vm9, %v563_v12, 0  ;;  %vm1231_vm9 = vcmp.eq.f32.partialorder %v2400_v4, 1.0 }
  0x77   : > { %763 = vrot.lane.b32.xlu0 %v1661_v20, %s2178_s18 }
  0xee   : > { %v545_v17 = vpop.permute.xlu0 %544 }
  0xef   : > { %vm547_vm5 = vcmp.eq.f32.partialorder %v2400_v4, %v545_v17  ;;  %v1914_v17 = vld [vmem:[%s2723_s8] sm:$0xff]  }
  0xf0   : > { %v1650_v18 = vsel %vm547_vm5, 1.0, %v2176_v14  ;;  %vm1168_vm5 = vcmp.eq.f32.partialorder %v2400_v4, 0.0 }
  0xf1   : > { %v550_v19 = vpack.c.bf16 %v1650_v18, %v1650_v18 }
  0xf2   : > { %v764_v34 = vpop.permute.xlu0 %763 }
  0xf3   : > { %1734 = vmatmul.mubr.msk.bf16.vlgmr.msra.gmra.mxu0 %vm594_vm6, %v550_v19 }
  0xf4   : > { %1755 = vmatprep.mubr.msk.bf16.mxu0 %vm2177_vm4, %v2176_v14  ;;  %1752 = vmatpush3.bf16.msra.mxu0 %v1909_v51 }
  0xf5   : > { %1753 = vmatprep.subr.bf16.mxu0 %v2176_v14 }
  0xf8   : > { %1754 = vmatpush3.bf16.msra.mxu0 %v1910_v52  ;;  %v2510_v52 = vld [vmem:[#allocation4] sm:$0xff] }
  0xf9   : > { %1765 = vmatprep.subr.bf16.mxu0 %v2176_v14 }
 0x1b3   : > { %v632_v21 = vpop.f32.mrf.mxu0 }
 0x1b4   : > { %v638_v23 = vpack.c.bf16 %v632_v21, %v632_v21  ;;  %v1911_v21 = vld [vmem:[%s2722_s7 + $0x8] sm:$0xff]  }
 0x1b5   : > { %v1735_v24 = vpop.f32.mrf.mxu0 }
 0x1b6   : > { %1740 = vmatmul.mubr.msk.bf16.vlgmr.msra.gmra.mxu1 %vm651_vm7, %v638_v23  ;;  %v1912_v23 = vld [vmem:[%s2722_s7] sm:$0xff]   ;;  %vm1228_vm7 = vcmp.eq.f32.partialorder %v2398_v3, 1.0 }
 0x1b7   : > { %1744 = vmatpush3.bf16.msra.mxu1 %v1907_v22  ;;  %v635_v25 = vpop.f32.mrf.mxu0  ;;  %1747 = vmatprep.mubr.msk.bf16.mxu1 %vm2177_vm4, %v2176_v14 }
 0x1b8   : > { %1745 = vmatprep.subr.bf16.mxu1 %v2176_v14 }
 0x1b9   : > { %v1736_v28 = vpop.f32.mrf.mxu0 }
 0x1bb   : > { %1746 = vmatpush3.bf16.msra.mxu1 %v1908_v26 }
 0x1bc   : > { %1759 = vmatprep.subr.bf16.mxu1 %v2176_v14 }
 0x1be   : > { %1748 = vmatmul.mubr.msk.bf16.vlgmr.msra.gmra.mxu1 %vm594_vm6, %v695_v29 }
 0x1bf   : > { %1761 = vmatprep.mubr.msk.bf16.mxu1 %vm2177_vm4, %v2176_v14  ;;  %1760 = vmatpush3.bf16.msra.mxu1 %v867_v15 }
 0x1c0   : > { %1773 = vmatprep.subr.bf16.mxu1 %v2176_v14 }
 0x276   : > { %v689_v30 = vpop.f32.mrf.mxu1 }
 0x277   : > { %v690_v41 = vadd.f32 %v1654_v40, %v689_v30 }
 0x278   : > { %v1741_v31 = vpop.f32.mrf.mxu1 }
 0x27a   : > { %v692_v32 = vpop.f32.mrf.mxu1 }
 0x27c   : > { %v1742_v33 = vpop.f32.mrf.mxu1 }
 0x27e   : > { %v745_v35 = vpop.f32.mrf.mxu1 }
 0x27f   : > { %v766_v36 = vadd.f32 %v764_v34, %v745_v35  ;;  %v751_v42 = vadd.f32 %v745_v35, %v690_v41  ;;  %v1915_v34 = vld [vmem:[#allocation16 + $0x8] sm:$0xff]   ;;  %v1916_v35 = vld [vmem:[#allocation16] sm:$0xff]  }
 0x280   : > { %v1749_v37 = vpop.f32.mrf.mxu1 }
 0x281   : > { %768 = vrot.lane.b32.xlu1 %v766_v36, %s2178_s18  ;;  %v1660_v43 = vmul.f32 -1.442695, %v751_v42  ;;  %v1672_v36 = vld [vmem:[%s2724_s9] ss:$0 sm:$0xff] }
 0x282   : > { %v748_v38 = vpop.f32.mrf.mxu1 }
 0x283   : > { %1917 = vpow2.f32 %v1660_v43 }
 0x284   : > { %v1750_v39 = vpop.f32.mrf.mxu1 }
 0x290   : > { %v1918_v44 = vpop.eup %1917 }
 0x291   : > { %v755_v45 = vadd.f32 1.0, %v1918_v44 }
 0x293   : > { %1919 = vrcp.f32 %v755_v45  ;;  %v1673_v45 = vld [vmem:[%s2726_s11] ss:$0 sm:$0xff] }
 0x2a0   : > { %v1920_v46 = vpop.eup %1919 }
 0x2a1   : > { %v778_v55 = vsub.f32 1.0, %v1920_v46 }
 0x2f3   : > { %v769_v47 = vpop.permute.xlu1 %768 }
 0x2f4   : > { %v771_v48 = vmul.f32 %v1920_v46, %v769_v47 }
 0x2f6   : > { %773 = vrot.lane.b32.xlu1 %v771_v48, %s2178_s18 }
 0x2fa   : > { %785 = vrot.lane.b32.xlu1 %v2444_v27, %s2179_s20 }
 0x368   : > { %v774_v49 = vpop.permute.xlu1 %773 }
 0x369   : > { %v776_v50 = vadd.f32 %v774_v49, %v690_v41 }
 0x36b   : > { %1921 = vtanh.f32 %v776_v50 }
 0x36c   : > { %v786_v54 = vpop.permute.xlu1 %785 }
 0x36d   : > { %v788_v57 = vmul.f32 %v1920_v46, %v786_v54 }
 0x378   : > { %v1922_v53 = vpop.eup %1921 }
 0x379   : > { %780 = vrot.lane.b32.xlu0 %v1922_v53, %s2180_s19 }
 0x3eb   : > { %v781_v56 = vpop.permute.xlu0 %780 }
 0x3ec   : > { %v783_v58 = vmul.f32 %v781_v56, %v778_v55 }
 0x3ee   : > { %v2465_v59 = vadd.f32 %v788_v57, %v783_v58 }
 0x3f0   : > { %v790_v60 = vpack.c.bf16 %v2465_v59, %v2465_v59 }
 0x3f2   : > { %792 = vrot.lane.b32.xlu0 %v790_v60, %s2180_s19  ;;  %v1107_v60 = vsel %vm2516_vm12, 1, %v2175_v13 }
 0x464   : > { %v793_v61 = vpop.permute.xlu0 %792 }
 0x465   : > { %1756 = vmatmul.mubr.msk.bf16.vlgmr.msra.gmra.mxu0 %vm594_vm6, %v793_v61 }
 0x466   : > { %1769 = vmatprep.mubr.msk.bf16.mxu0 %vm2177_vm4, %v2176_v14  ;;  %1766 = vmatpush3.bf16.msra.mxu0 %v1913_v16 }
 0x467   : > { %1767 = vmatprep.subr.bf16.mxu0 %v2176_v14 }
 0x46a   : > { %1768 = vmatpush3.bf16.msra.mxu0 %v1914_v17 }
 0x46b   : > { %1781 = vmatprep.subr.bf16.mxu0 %v2176_v14 }
 0x525   : > { %v843_v62 = vpop.f32.mrf.mxu0 }
 0x526   : > { %v850_v63 = vsel %vm849_vm8, %v843_v62, -inf }
 0x527   : > { %851 = vmax.xlane.f32.xlu1 %v850_v63  ;;  %v1757_v0 = vpop.f32.mrf.mxu0 }
 0x529   : > { %v846_v2 = vpop.f32.mrf.mxu0 }
 0x52b   : > { %v1758_v5 = vpop.f32.mrf.mxu0 }
 0x5b0   : > { %v852_v6 = vpop.xlane.xlu1 %851 }
 0x5b1   : > { %v853_v7 = vsub.f32 %v843_v62, %v852_v6 }
 0x5b3   : > { %v854_v8 = vmul.f32 1.442695, %v853_v7 }
 0x5b5   : > { %1923 = vpow2.f32 %v854_v8 }
 0x5c2   : > { %v1924_v9 = vpop.eup %1923 }
 0x5c3   : > { %v856_v10 = vsel %vm849_vm8, %v1924_v9, 0.0 }
 0x5c4   : > { %857 = vadd.xlane.f32.xlu0 %v856_v10 }
 0x64d   : > { %v858_v18 = vpop.xlane.xlu0 %857 }
 0x64e   : > { %1925 = vrcp.f32 %v858_v18 }
 0x65b   : > { %v1926_v19 = vpop.eup %1925 }
 0x65c   : > { %v860_v20 = vmul.f32 %v1926_v19, %v1924_v9 }
 0x65e   : > { %v861_v22 = vpack.c.bf16 %v860_v20, %v860_v20 }
 0x660   : > { %1762 = vmatmul.mubr.msk.bf16.vlgmr.msra.gmra.mxu1 %vm849_vm8, %v861_v22 }
 0x661   : > { %1774 = vmatpush3.bf16.msra.mxu1 %v1911_v21  ;;  %1777 = vmatprep.mubr.msk.bf16.mxu1 %vm2177_vm4, %v2176_v14 }
 0x662   : > { %1775 = vmatprep.subr.bf16.mxu1 %v2176_v14 }
 0x665   : > { %1776 = vmatpush3.bf16.msra.mxu1 %v1912_v23 }
 0x666   : > { %1789 = vmatprep.subr.mxu1 %v2176_v14 }
 0x668   : > { %1778 = vmatmul.mubr.msk.bf16.vlgmr.msra.gmra.mxu1 %vm594_vm6, %v793_v61 }
 0x669   : > { %1791 = vmatprep.mubr.msk.f32.mxu1 %vm2177_vm4, %v2176_v14 }
 0x720   : > { %v903_v24 = vpop.f32.mrf.mxu1 }
 0x721   : > { %v909_v25 = vpack.c.bf16 %v903_v24, %v903_v24 }
 0x722   : > { %v1763_v26 = vpop.f32.mrf.mxu1 }
 0x723   : > { %1770 = vmatmul.mubr.msk.bf16.vlgmr.msra.gmra.mxu0 %vm594_vm6, %v909_v25 }
 0x724   : > { %v906_v28 = vpop.f32.mrf.mxu1  ;;  %1785 = vmatprep.mubr.msk.bf16.mxu0 %vm2177_vm4, %v2176_v14  ;;  %1782 = vmatpush3.bf16.msra.mxu0 %v1915_v34  ;;  %vm1165_vm4 = vcmp.eq.f32.partialorder %v2398_v3, 0.0 }
 0x725   : > { %1783 = vmatprep.subr.bf16.mxu0 %v2176_v14 }
 0x726   : > { %v1764_v29 = vpop.f32.mrf.mxu1 }
 0x728   : > { %v1011_v30 = vpop.f32.mrf.mxu1  ;;  %1784 = vmatpush3.bf16.msra.mxu0 %v1916_v35 }
 0x72a   : > { %v1779_v31 = vpop.f32.mrf.mxu1 }
 0x72c   : > { %v1014_v32 = vpop.f32.mrf.mxu1 }
 0x72e   : > { %v1780_v33 = vpop.f32.mrf.mxu1 }
 0x7e3   : > { %v959_v37 = vpop.f32.mrf.mxu0 }
 0x7e4   : > { %v1012_v38 = vadd.f32 %v1011_v30, %v959_v37 }
 0x7e5   : > { %v1771_v39 = vpop.f32.mrf.mxu0 }
 0x7e6   : > { %v1023_v40 = vadd.f32 %v1672_v36, %v1012_v38 }
 0x7e7   : > { %v962_v41 = vpop.f32.mrf.mxu0 }
 0x7e8   : > { %1927 = vtanh.f32 %v1023_v40 }
 0x7e9   : > { %v1772_v42 = vpop.f32.mrf.mxu0 }
 0x7f5   : > { %v1928_v43 = vpop.eup %1927 }
 0x7f6   : > { %v1025_v44 = vpack.c.bf16 %v1928_v43, %v1928_v43 }
 0x7f8   : > { %1786 = vmatmul.mubr.msk.bf16.vlgmr.msra.gmra.mxu0 %vm594_vm6, %v1025_v44 }
 0x8b8   : > { %v1081_v46 = vpop.f32.mrf.mxu0 }
 0x8b9   : > { %v1082_v47 = vadd.f32 %v1673_v45, %v1081_v46 }
 0x8ba   : > { %v1787_v48 = vpop.f32.mrf.mxu0 }
 0x8bb   : > { %v1087_v49 = vsel %vm594_vm6, %v1082_v47, -inf }
 0x8bc   : > { %1088 = vmax.xlane.f32.xlu0 %v1087_v49  ;;  %v1084_v50 = vpop.f32.mrf.mxu0  ;;  %v2544_v49 = vsel %vm1168_vm5, 1.0, %v2176_v14 }
 0x8bd   : > { %v2547_v50 = vsel %vm1228_vm7, 1.0, %v2176_v14 }
 0x8be   : > { %v1788_v51 = vpop.f32.mrf.mxu0 }
 0x8bf   : > { %v2550_v51 = vsel %vm1231_vm9, 1.0, %v2176_v14 }
 0x8d2   : > { %1103 = vperm.xlu0 %1902, %v2510_v52  }
 0x945   : > { %v1089_v53 = vpop.xlane.xlu0 %1088 }
 0x946   : > { %v1090_v54 = vsub.f32 %v1082_v47, %v1089_v53  ;;  %v2541_v47 = vsel %vm1165_vm4, 1.0, %v2176_v14  ;;  %vm1294_vm4 = vcmp.eq.f32.partialorder %v2400_v4, 2.0 }
 0x948   : > { %v1091_v55 = vmul.f32 1.442695, %v1090_v54 }
 0x94a   : > { %1929 = vpow2.f32 %v1091_v55 }
 0x94d   : > { %v1104_v2 = vpop.permute.xlu0 %1103 }
 0x957   : > { %v1930_v56 = vpop.eup %1929 }
 0x958   : > { %v1093_v57 = vsel %vm594_vm6, %v1930_v56, 0.0 }
 0x959   : > { %1094 = vadd.xlane.f32.xlu1 %v1093_v57 }
 0x96a   : > { %1109 = vperm.xlu1 %1903, %v1107_v60  }
 0x9e2   : > { %v1095_v61 = vpop.xlane.xlu1 %1094 }
 0x9e3   : > { %1931 = vrcp.f32 %v1095_v61 }
 0x9e6   : > { %v1110_v62 = vpop.permute.xlu1 %1109 }
 0x9e7   : > { %vm1111_vm13 = vcmp.eq.s32.totalorder %v1110_v62, 1 }
 0x9f0   : > { %v1932_v63 = vpop.eup %1931 }
 0x9f1   : > { %v1097_v0 = vmul.f32 %v1932_v63, %v1930_v56 }
 0x9f3   : > { %v1106_v5 = vmul.f32 %v1104_v2, %v1097_v0 }
 0x9f5   : > { %v1112_v6 = vsel %vm1111_vm13, %v1106_v5, -1e+30 }
 0x9f6   : > { %v1123_v7 = vsel %vm594_vm6, %v1112_v6, -inf }
 0x9f7   : > { %1124 = vmax.xlane.f32.xlu1 %v1123_v7 }
 0xa80   : > { %v1125_v8 = vpop.xlane.xlu1 %1124 }
 0xa81   : > { %v1126_v9 = vrot.slane %v1125_v8, 4 }
 0xa83   : > { %v1127_v10 = vmax.f32 %v1125_v8, %v1126_v9 }
 0xa85   : > { %v1128_v12 = vrot.slane %v1127_v10, 2 }
 0xa87   : > { %v1129_v15 = vmax.f32 %v1127_v10, %v1128_v12 }
 0xa89   : > { %v1130_v16 = vrot.slane %v1129_v15, 1 }
 0xa8b   : > { %v1131_v17 = vmax.f32 %v1129_v15, %v1130_v16 }
 0xa8d   : > { %vm1132_vm14 = vcmp.ge.f32.partialorder %v1125_v8, %v1131_v17  ;;  %v1173_v54 = vmul.f32 %v2541_v47, %v1131_v17  ;;  %v1177_v55 = vmul.f32 %v2544_v49, %v1131_v17 }
 0xa8e   : > { %v1133_v18 = vsel %vm1132_vm14, %v2398_v3, 8.0 }
 0xa8f   : > { %v1134_v19 = vrot.slane %v1133_v18, 4 }
 0xa91   : > { %v1135_v20 = vmin.f32 %v1133_v18, %v1134_v19 }
 0xa93   : > { %v1136_v21 = vrot.slane %v1135_v20, 2 }
 0xa95   : > { %v1137_v22 = vmin.f32 %v1135_v20, %v1136_v21 }
 0xa97   : > { %v1138_v23 = vrot.slane %v1137_v22, 1 }
 0xa99   : > { %v1139_v24 = vmin.f32 %v1137_v22, %v1138_v23 }
 0xa9b   : > { %vm1140_vm15 = vcmp.eq.f32.partialorder %v2398_v3, %v1139_v24  ;;  %vm1143_vm11 = vcmp.eq.f32.partialorder %v2400_v4, %v1139_v24  ;;  %v1179_v9 = vmul.f32 %v2544_v49, %v1139_v24 }
 0xa9c   : > { %v1678_v25 = vsel %vm1140_vm15, 1.0, %v2176_v14  ;;  %v1679_v8 = vsel %vm1143_vm11, 1.0, %v2176_v14 }
 0xa9d   : > { %vm1146_vm0 = vcmp.gt.f32.partialorder %v1678_v25, 0.5  ;;  %v1181_v16 = vmul.f32 %v2541_v47, %v1679_v8 }
 0xa9e   : > { %v1149_v26 = vsel %vm1146_vm0, %v1112_v6, -1e+30 }
 0xa9f   : > { %v1150_v28 = vsel %vm594_vm6, %v1149_v26, -inf }
 0xaa0   : > { %v1151_v29 = vrot.slane %v1150_v28, 4 }
 0xaa2   : > { %v1152_v30 = vmax.f32 %v1150_v28, %v1151_v29 }
 0xaa4   : > { %v1153_v31 = vrot.slane %v1152_v30, 2 }
 0xaa6   : > { %v1154_v32 = vmax.f32 %v1152_v30, %v1153_v31 }
 0xaa8   : > { %v1155_v33 = vrot.slane %v1154_v32, 1 }
 0xaaa   : > { %v1156_v34 = vmax.f32 %v1154_v32, %v1155_v33 }
 0xaac   : > { %vm1157_vm1 = vcmp.ge.f32.partialorder %v1156_v34, %v1131_v17 }
 0xaad   : > { %v1158_v35 = vsel %vm1157_vm1, %v2400_v4, 32.0 }
 0xaae   : > { %v1159_v36 = vsel %vm594_vm6, %v1158_v35, inf }
 0xaaf   : > { %1160 = vmin.xlane.f32.xlu0 %v1159_v36 }
 0xb38   : > { %v2530_v37 = vpop.xlane.xlu0 %1160 }
 0xb39   : > { %vm1162_vm2 = vcmp.eq.f32.partialorder %v2400_v4, %v2530_v37 }
 0xb3a   : > { %v1680_v38 = vsel %vm1162_vm2, 1.0, %v2176_v14 }
 0xb3b   : > { %v1183_v39 = vmul.f32 %v1680_v38, %v1678_v25 }
 0xb3d   : > { %vm1184_vm3 = vcmp.gt.f32.partialorder %v1183_v39, 0.5 }
 0xb3e   : > { %v1185_v40 = vsel %vm1184_vm3, -1e+30, %v1112_v6  ;;  %vm1291_vm3 = vcmp.eq.f32.partialorder %v2398_v3, 2.0 }
 0xb3f   : > { %v1186_v41 = vsel %vm594_vm6, %v1185_v40, -inf }
 0xb40   : > { %1187 = vmax.xlane.f32.xlu0 %v1186_v41 }
 0xbc9   : > { %v1188_v42 = vpop.xlane.xlu0 %1187 }
 0xbca   : > { %v1189_v43 = vrot.slane %v1188_v42, 4 }
 0xbcc   : > { %v1190_v44 = vmax.f32 %v1188_v42, %v1189_v43 }
 0xbce   : > { %v1191_v45 = vrot.slane %v1190_v44, 2 }
 0xbd0   : > { %v1192_v46 = vmax.f32 %v1190_v44, %v1191_v45  ;;  %v2579_v44 = vsel %vm1291_vm3, 1.0, %v2176_v14  ;;  %v2582_v45 = vsel %vm1294_vm4, 1.0, %v2176_v14 }
 0xbd2   : > { %v1193_v48 = vrot.slane %v1192_v46, 1 }
 0xbd4   : > { %v1194_v53 = vmax.f32 %v1192_v46, %v1193_v48 }
 0xbd6   : > { %vm1195_vm10 = vcmp.ge.f32.partialorder %v1188_v42, %v1194_v53  ;;  %v1236_v56 = vmul.f32 %v2547_v50, %v1194_v53  ;;  %v1240_v57 = vmul.f32 %v2550_v51, %v1194_v53 }
 0xbd7   : > { %v1196_v60 = vsel %vm1195_vm10, %v2398_v3, 8.0 }
 0xbd8   : > { %v1197_v61 = vrot.slane %v1196_v60, 4  ;;  %v1237_v62 = vadd.f32 %v1236_v56, %v1173_v54  ;;  %v1241_v63 = vadd.f32 %v1240_v57, %v1177_v55 }
 0xbda   : > { %v1198_v0 = vmin.f32 %v1196_v60, %v1197_v61 }
 0xbdc   : > { %v1199_v2 = vrot.slane %v1198_v0, 2 }
 0xbde   : > { %v1200_v5 = vmin.f32 %v1198_v0, %v1199_v2 }
 0xbe0   : > { %v1201_v6 = vrot.slane %v1200_v5, 1 }
 0xbe2   : > { %v1202_v7 = vmin.f32 %v1200_v5, %v1201_v6 }
 0xbe4   : > { %vm1203_vm13 = vcmp.eq.f32.partialorder %v2398_v3, %v1202_v7  ;;  %vm1206_vm14 = vcmp.eq.f32.partialorder %v2400_v4, %v1202_v7  ;;  %v1242_v10 = vmul.f32 %v2550_v51, %v1202_v7 }
 0xbe5   : > { %v1683_v12 = vsel %vm1203_vm13, 1.0, %v2176_v14  ;;  %v1684_v15 = vsel %vm1206_vm14, 1.0, %v2176_v14 }
 0xbe6   : > { %vm1209_vm15 = vcmp.gt.f32.partialorder %v1683_v12, 0.5  ;;  %v1243_v17 = vadd.f32 %v1242_v10, %v1179_v9  ;;  %v1244_v18 = vmul.f32 %v2547_v50, %v1684_v15 }
 0xbe7   : > { %v1212_v19 = vsel %vm1209_vm15, %v1185_v40, -1e+30  ;;  %vm1114_vm15 = vcmask 7168  }
 0xbe8   : > { %v1213_v20 = vsel %vm594_vm6, %v1212_v19, -inf  ;;  %v1245_v21 = vadd.f32 %v1244_v18, %v1181_v16 }
 0xbe9   : > { %v1214_v22 = vrot.slane %v1213_v20, 4 }
 0xbeb   : > { %v1215_v23 = vmax.f32 %v1213_v20, %v1214_v22 }
 0xbed   : > { %v1216_v24 = vrot.slane %v1215_v23, 2 }
 0xbef   : > { %v1217_v25 = vmax.f32 %v1215_v23, %v1216_v24 }
 0xbf1   : > { %v1218_v26 = vrot.slane %v1217_v25, 1 }
 0xbf3   : > { %v1219_v28 = vmax.f32 %v1217_v25, %v1218_v26 }
 0xbf5   : > { %vm1220_vm0 = vcmp.ge.f32.partialorder %v1219_v28, %v1194_v53 }
 0xbf6   : > { %v1221_v29 = vsel %vm1220_vm0, %v2400_v4, 32.0  ;;  %vm1351_vm0 = vcmp.eq.f32.partialorder %v2398_v3, 3.0 }
 0xbf7   : > { %v1222_v30 = vsel %vm594_vm6, %v1221_v29, inf  ;;  %v1677_v29 = vsel %vm2516_vm12, 1.0, %v2176_v14  ;;  %v1695_v58 = vsel %vm1351_vm0, 1.0, %v2176_v14 }
 0xbf8   : > { %1223 = vmin.xlane.f32.xlu1 %v1222_v30 }
 0xc81   : > { %v2570_v31 = vpop.xlane.xlu1 %1223 }
 0xc82   : > { %vm1225_vm1 = vcmp.eq.f32.partialorder %v2400_v4, %v2570_v31 }
 0xc83   : > { %v1685_v32 = vsel %vm1225_vm1, 1.0, %v2176_v14  ;;  %vm1354_vm1 = vcmp.eq.f32.partialorder %v2400_v4, 3.0 }
 0xc84   : > { %v1246_v33 = vmul.f32 %v1685_v32, %v1683_v12 }
 0xc86   : > { %vm1247_vm2 = vcmp.gt.f32.partialorder %v1246_v33, 0.5 }
 0xc87   : > { %v1248_v34 = vsel %vm1247_vm2, -1e+30, %v1185_v40 }
 0xc88   : > { %v1249_v35 = vsel %vm594_vm6, %v1248_v34, -inf }
 0xc89   : > { %1250 = vmax.xlane.f32.xlu0 %v1249_v35 }
 0xd12   : > { %v1251_v36 = vpop.xlane.xlu0 %1250 }
 0xd13   : > { %v1252_v38 = vrot.slane %v1251_v36, 4 }
 0xd15   : > { %v1253_v39 = vmax.f32 %v1251_v36, %v1252_v38 }
 0xd17   : > { %v1254_v41 = vrot.slane %v1253_v39, 2 }
 0xd19   : > { %v1255_v42 = vmax.f32 %v1253_v39, %v1254_v41 }
 0xd1b   : > { %v1256_v43 = vrot.slane %v1255_v42, 1 }
 0xd1d   : > { %v1257_v40 = vmax.f32 %v1255_v42, %v1256_v43 }
 0xd1f   : > { %vm1258_vm5 = vcmp.ge.f32.partialorder %v1251_v36, %v1257_v40  ;;  %v1299_v46 = vmul.f32 %v2579_v44, %v1257_v40  ;;  %v1303_v48 = vmul.f32 %v2582_v45, %v1257_v40 }
 0xd20   : > { %v1259_v53 = vsel %vm1258_vm5, %v2398_v3, 8.0 }
 0xd21   : > { %v1260_v54 = vrot.slane %v1259_v53, 4  ;;  %v2587_v55 = vadd.f32 %v1299_v46, %v1237_v62  ;;  %v2589_v56 = vadd.f32 %v1303_v48, %v1241_v63  ;;  %v1696_v46 = vsel %vm1354_vm1, 1.0, %v2176_v14 }
 0xd23   : > { %v1261_v57 = vmin.f32 %v1259_v53, %v1260_v54 }
 0xd25   : > { %v1262_v60 = vrot.slane %v1261_v57, 2 }
 0xd27   : > { %v1263_v61 = vmin.f32 %v1261_v57, %v1262_v60 }
 0xd29   : > { %v1264_v0 = vrot.slane %v1263_v61, 1 }
 0xd2b   : > { %v1265_v2 = vmin.f32 %v1263_v61, %v1264_v0 }
 0xd2d   : > { %vm1266_vm7 = vcmp.eq.f32.partialorder %v2398_v3, %v1265_v2  ;;  %vm1269_vm9 = vcmp.eq.f32.partialorder %v2400_v4, %v1265_v2  ;;  %v1305_v5 = vmul.f32 %v2582_v45, %v1265_v2 }
 0xd2e   : > { %v1688_v6 = vsel %vm1266_vm7, 1.0, %v2176_v14  ;;  %v1689_v7 = vsel %vm1269_vm9, 1.0, %v2176_v14 }
 0xd2f   : > { %vm1272_vm10 = vcmp.gt.f32.partialorder %v1688_v6, 0.5  ;;  %v2596_v62 = vadd.f32 %v1305_v5, %v1243_v17  ;;  %v1307_v63 = vmul.f32 %v2579_v44, %v1689_v7 }
 0xd30   : > { %v1275_v8 = vsel %vm1272_vm10, %v1248_v34, -1e+30  ;;  %vm1474_vm10 = vcmp.eq.s32.totalorder %v2395_v1, 1 }
 0xd31   : > { %v1276_v9 = vsel %vm594_vm6, %v1275_v8, -inf  ;;  %v2600_v10 = vadd.f32 %v1307_v63, %v1245_v21 }
 0xd32   : > { %v1277_v12 = vrot.slane %v1276_v9, 4 }
 0xd34   : > { %v1278_v15 = vmax.f32 %v1276_v9, %v1277_v12 }
 0xd36   : > { %v1279_v16 = vrot.slane %v1278_v15, 2 }
 0xd38   : > { %v1280_v18 = vmax.f32 %v1278_v15, %v1279_v16 }
 0xd3a   : > { %v1281_v19 = vrot.slane %v1280_v18, 1 }
 0xd3c   : > { %v1282_v20 = vmax.f32 %v1280_v18, %v1281_v19 }
 0xd3e   : > { %vm1283_vm11 = vcmp.ge.f32.partialorder %v1282_v20, %v1257_v40 }
 0xd3f   : > { %v1284_v22 = vsel %vm1283_vm11, %v2400_v4, 32.0  ;;  %vm1485_vm11 = vcmp.eq.s32.totalorder %v2395_v1, 2 }
 0xd40   : > { %v1285_v23 = vsel %vm594_vm6, %v1284_v22, inf }
 0xd41   : > { %1286 = vmin.xlane.f32.xlu1 %v1285_v23 }
 0xd52   : > { %1370 = vrot.lane.b32.xlu1 %v2465_v59, %s2180_s19  ;;  %v1115_v59 = vsel %vm1114_vm15, %v1677_v29, 0.0 }
 0xd53   : > { %v1116_v30 = vrot.slane %v1115_v59, 4 }
 0xd55   : > { %v1117_v32 = vadd.f32 %v1116_v30, %v1115_v59 }
 0xd57   : > { %v1118_v33 = vrot.slane %v1117_v32, 2 }
 0xd59   : > { %v1119_v38 = vadd.f32 %v1118_v33, %v1117_v32 }
 0xd5b   : > { %v1120_v42 = vrot.slane %v1119_v38, 1 }
 0xd5d   : > { %v1121_v40 = vadd.f32 %v1120_v42, %v1119_v38  ;;  %v1470_v38 = vsub.s32 0, %v2395_v1 }
 0xd5f   : > { %vm1122_vm2 = vcmp.lt.f32.partialorder %v1121_v40, 0.5 }
 0xdca   : > { %v2606_v17 = vpop.xlane.xlu1 %1286 }
 0xdcb   : > { %vm1288_vm13 = vcmp.eq.f32.partialorder %v2400_v4, %v2606_v17  ;;  %v1301_v32 = vmul.f32 %v2582_v45, %v2606_v17 }
 0xdcc   : > { %v1690_v21 = vsel %vm1288_vm13, 1.0, %v2176_v14 }
 0xdcd   : > { %v1309_v24 = vmul.f32 %v1690_v21, %v1688_v6 }
 0xdce   : > { %v1371_v25 = vpop.permute.xlu1 %1370 }
 0xdcf   : > { %1790 = vmatpush3.msra.mxu1 %v1371_v25  ;;  %vm1310_vm14 = vcmp.gt.f32.partialorder %v1309_v24, 0.5  ;;  %v1171_v25 = vmul.f32 %v2541_v47, %v2530_v37 }
 0xdd0   : > { %v1311_v26 = vsel %vm1310_vm14, -1e+30, %v1248_v34 }
 0xdd1   : > { %v1312_v28 = vsel %vm594_vm6, %v1311_v26, -inf }
 0xdd2   : > { %1313 = vmax.xlane.f32.xlu0 %v1312_v28 }
 0xe5b   : > { %v1314_v35 = vpop.xlane.xlu0 %1313 }
 0xe5c   : > { %v1315_v36 = vrot.slane %v1314_v35, 4 }
 0xe5e   : > { %v1316_v39 = vmax.f32 %v1314_v35, %v1315_v36  ;;  %v539_v36 = vld [vmem:[#allocation5] sm:$0x1] }
 0xe60   : > { %v1317_v41 = vrot.slane %v1316_v39, 2 }
 0xe62   : > { %v1318_v34 = vmax.f32 %v1316_v39, %v1317_v41 }
 0xe64   : > { %v1319_v43 = vrot.slane %v1318_v34, 1 }
 0xe66   : > { %v1320_v48 = vmax.f32 %v1318_v34, %v1319_v43 }
 0xe68   : > { %vm1321_vm12 = vcmp.ge.f32.partialorder %v1314_v35, %v1320_v48  ;;  %v1359_v53 = vmul.f32 %v1695_v58, %v1320_v48  ;;  %v1363_v54 = vmul.f32 %v1696_v46, %v1320_v48 }
 0xe69   : > { %v1322_v57 = vsel %vm1321_vm12, %v2398_v3, 8.0 }
 0xe6a   : > { %v1323_v60 = vrot.slane %v1322_v57, 4  ;;  %v1360_v61 = vadd.f32 %v1359_v53, %v2587_v55  ;;  %v1364_v0 = vadd.f32 %v1363_v54, %v2589_v56 }
 0xe6c   : > { %v1324_v2 = vmin.f32 %v1322_v57, %v1323_v60  ;;  %v1454_v5 = vsel %vm1122_vm2, %v2510_v52, %v1360_v61 }
 0xe6d   : > { %1460 = vst.msk [vmem:[#allocation4] sm:$0xff] %vm1114_vm15, %v1454_v5 }
 0xe6e   : > { %v1325_v6 = vrot.slane %v1324_v2, 2 }
 0xe70   : > { %v1326_v7 = vmin.f32 %v1324_v2, %v1325_v6 }
 0xe72   : > { %v1327_v63 = vrot.slane %v1326_v7, 1 }
 0xe74   : > { %v1328_v8 = vmin.f32 %v1326_v7, %v1327_v63 }
 0xe76   : > { %vm1332_vm3 = vcmp.eq.f32.partialorder %v2400_v4, %v1328_v8  ;;  %vm1329_vm4 = vcmp.eq.f32.partialorder %v2398_v3, %v1328_v8  ;;  %v1365_v9 = vmul.f32 %v1696_v46, %v1328_v8 }
 0xe77   : > { %v1694_v12 = vsel %vm1332_vm3, 1.0, %v2176_v14  ;;  %v1693_v55 = vsel %vm1329_vm4, 1.0, %v2176_v14 }
 0xe78   : > { %v1367_v56 = vmul.f32 %v1695_v58, %v1694_v12  ;;  %vm1335_vm5 = vcmp.gt.f32.partialorder %v1693_v55, 0.5  ;;  %v1366_v15 = vadd.f32 %v1365_v9, %v2596_v62  ;;  %v1446_v62 = vsel %vm1122_vm2, 1, %v2175_v13 }
 0xe79   : > { %v1338_v52 = vsel %vm1335_vm5, %v1311_v26, -1e+30  ;;  %v1297_v26 = vmul.f32 %v2579_v44, %v2606_v17  ;;  %v1175_v13 = vmul.f32 %v2544_v49, %v2530_v37 }
 0xe7a   : > { %v1368_v16 = vadd.f32 %v1367_v56, %v2600_v10  ;;  %v1339_v18 = vsel %vm594_vm6, %v1338_v52, -inf  ;;  %v1234_v10 = vmul.f32 %v2547_v50, %v2570_v31 }
 0xe7b   : > { %v1340_v19 = vrot.slane %v1339_v18, 4 }
 0xe7c   : > { %1792 = vmatmul.mubr.msk.f32.vlgmr.msra.gmra.mxu1 %vm849_vm8, %v1368_v16  ;;  %v1235_v28 = vadd.f32 %v1234_v10, %v1171_v25  ;;  %vm1464_vm8 = vcmp.eq.s32.totalorder %v2395_v1, 0 }
 0xe7d   : > { %v1341_v20 = vmax.f32 %v1339_v18, %v1340_v19 }
 0xe7e   : > { %v1298_v59 = vadd.f32 %v1297_v26, %v1235_v28 }
 0xe7f   : > { %v1342_v22 = vrot.slane %v1341_v20, 2 }
 0xe81   : > { %v1343_v3 = vmax.f32 %v1341_v20, %v1342_v22 }
 0xe83   : > { %v1344_v23 = vrot.slane %v1343_v3, 1 }
 0xe85   : > { %v1345_v21 = vmax.f32 %v1343_v3, %v1344_v23 }
 0xe87   : > { %vm1346_vm7 = vcmp.ge.f32.partialorder %v1345_v21, %v1320_v48 }
 0xe88   : > { %v1347_v14 = vsel %vm1346_vm7, %v2400_v4, 32.0  ;;  %v1238_v4 = vmul.f32 %v2550_v51, %v2570_v31  ;;  %v540_v51 = vld [vmem:[#allocation6] sm:$0x1]  ;;  %v541_v31 = vld [vmem:[#allocation7] sm:$0x1] }
 0xe89   : > { %v1348_v24 = vsel %vm594_vm6, %v1347_v14, inf }
 0xe8a   : > { %1349 = vmin.xlane.f32.xlu0 %v1348_v24  ;;  %v1239_v33 = vadd.f32 %v1238_v4, %v1175_v13 }
 0xe8c   : > { %v1302_v44 = vadd.f32 %v1301_v32, %v1239_v33 }
 0xea0   : > { %1448 = vperm.xlu0 %1902, %v1446_v62  }
 0xf13   : > { %v1350_v29 = vpop.xlane.xlu0 %1349 }
 0xf14   : > { %v1357_v30 = vmul.f32 %v1695_v58, %v1350_v29  ;;  %v1361_v35 = vmul.f32 %v1696_v46, %v1350_v29 }
 0xf16   : > { %v1358_v50 = vadd.f32 %v1357_v30, %v1298_v59  ;;  %v1362_v39 = vadd.f32 %v1361_v35, %v1302_v44 }
 0xf18   : > { %v1453_v47 = vsel %vm1122_vm2, %v2410_v11, %v1358_v50 }
 0xf19   : > { %1459 = vst.msk [vmem:[#allocation3] sm:$0xff] %vm1114_vm15, %v1453_v47 }
 0xf1b   : > { %v1449_v41 = vpop.permute.xlu0 %1448 }
 0xf1c   : > { %vm1450_vm9 = vcmp.eq.s32.totalorder %v1449_v41, 1 }
 0xf1d   : > { %v1455_v37 = vsel %vm1450_vm9, %v539_v36, %v1362_v39  ;;  %v1456_v11 = vsel %vm1450_vm9, %v540_v51, %v1364_v0  ;;  %v1457_v49 = vsel %vm1450_vm9, %v541_v31, %v1366_v15 }
 0xf1e   : > { %1461 = vst [vmem:[#allocation5] sm:$0x1] %v1455_v37  ;;  %1462 = vst [vmem:[#allocation6] sm:$0x1] %v1456_v11  ;;  %v1471_v45 = vrot.slane %v1455_v37, %v1470_v38  ;;  %v1481_v17 = vrot.slane %v1457_v49, %v1470_v38  ;;  %v1492_v42 = vrot.slane %v1456_v11, %v1470_v38 }
 0xf1f   : > { %1463 = vst [vmem:[#allocation7] sm:$0x1] %v1457_v49 }
 0xf20   : > { %v1473_v34 = vsel %vm1464_vm8, %v1471_v45, 0.0  ;;  %v1483_v43 = vsel %vm1474_vm10, %v1481_v17, 0.0  ;;  %v1494_v40 = vsel %vm1485_vm11, %v1492_v42, 0.0 }
 0xf21   : > { %v1484_v58 = vadd.f32 %v1483_v43, %v1473_v34 }
 0xf23   : > { %v1495_v46 = vadd.f32 %v1494_v40, %v1484_v58 }
 0xf25   : > { %1496 = vst [vmem:[%s509_s25] sm:$0xff] %v1495_v46 }
 0xf3a   : > { %1500 = sbr.rel (%p1698_p4) target bundleno = 3904 (0xf40), region = 100 }
 0xf3c   : > { %v1442_v48 = vpop.f32.mrf.mxu1 }
 0xf3d   : > { %v1451_v53 = vsel %vm1450_vm9, %v2444_v27, %v1442_v48 }
 0xf3e   : > { %1458 = vst.msk [vmem:[#allocation2] sm:$0xff] %vm594_vm6, %v1451_v53  ;;  %v1793_v54 = vpop.f32.mrf.mxu1 }
 0xf3f   : > { %1501 = vst.msk [vmem:[#allocation18] sm:$0xff] %vm594_vm6, %v1451_v53 }
 0xf40 PF: > { %s1700_s19 = sshll.u32 %s2279_s17, 7  ;;  %s1516_s20 = sshll.u32 %s509_s25, 4  ;;  %s1517_s20 = int_to_ptr.vmem [resolvable:$true] %s1516_s20 }
 0xf41   : > { %s1514_s29 = scalar_lea.hbm %s2728_s13, %s1700_s19  ;;  %s1503_s24 = scalar_lea.sflag [#allocation10], %s507_s3 }
 0xf42   : > { %s2063_s27 = scalar_lea.vmem %s1517_s20, 128  ;;  %p2763_p5 = scmp.ne.s32.totalorder %s2745_s23, 0 }
 0xf43   : > { %p2064_p7 = scmp.ne.s32.totalorder %s1517_s20, %s2063_s27  ;;  %s2181_s26 = smov [#allocation17]  }
 0xf44   : > { %s2067_s28 = sshll.u32 %s2181_s26, 4  ;;  %s2068_s28 = int_to_ptr.vmem [resolvable:$false] %s2067_s28 }
 0xf45   : > { %p2065_p6 = pnand %p2064_p7, %p2763_p5  ;;  %s2069_s18 = scalar_lea.vmem %s2068_s28, 256 }
 0xf46   : > { %p2070_p8 = scmp.lt.s32.totalorder %s1517_s20, %s2068_s28  ;;  %p2071_p12 = scmp.lt.s32.totalorder %s2069_s18, %s2063_s27 }
 0xf47   : > { %p2066_p11 = pneg %p2065_p6 }
 0xf48   : > { %p2072_p0 = por %p2071_p12, %p2070_p8 }
 0xf4a   : > { %p2073_p1 = pnand %p2072_p0, %p2066_p11 }
 0xf4c   : > { %2076 = shalt.err (!%p2073_p1)
}
 0xf4d   : > { %s2077_s22 = scalar_lea.hbm %s1514_s29, 128  ;;  %s2081_s25 = scalar_lea.hbm %s2728_s13, 640 }
 0xf4e   : > { %p2078_p3 = scmp.ne.s32.totalorder %s1514_s29, %s2077_s22  ;;  %p2082_p13 = scmp.lt.s32.totalorder %s1514_s29, %s2728_s13 }
 0xf4f   : > { %p2083_p10 = scmp.lt.s32.totalorder %s2081_s25, %s2077_s22 }
 0xf50   : > { %p2079_p2 = pnand %p2078_p3, %p2763_p5 }
 0xf51   : > { %p2084_p4 = por %p2083_p10, %p2082_p13 }
 0xf52   : > { %p2080_p9 = pneg %p2079_p2 }
 0xf54   : > { %p2085_p7 = pnand %p2084_p4, %p2080_p9 }
 0xf56   : > { %2088 = shalt.err (!%p2085_p7)
}
 0xf57   : > { %1814 = dma.vmem_to_hbm [thread:$0]  (%p2763_p5), %s1517_s20, 128, %s1514_s29, %s1503_s24  }
 0xf58   : > { %s2182_s5 = smov [#allocation18]   ;;  %p2764_p11 = scmp.eq.s32.totalorder %s2279_s17, 4 }
 0xf59   : > { %s1527_s27 = sshll.u32 %s2182_s5, 4  ;;  %s1528_s27 = int_to_ptr.vmem [resolvable:$true] %s1527_s27 }
 0xf5a   : > { %s2089_s26 = scalar_lea.vmem %s1528_s27, 128  ;;  %p2096_p0 = scmp.lt.s32.totalorder %s1528_s27, %s1528_s27 }
 0xf5b   : > { %p2090_p6 = scmp.ne.s32.totalorder %s1528_s27, %s2089_s26  ;;  %p2097_p1 = scmp.lt.s32.totalorder %s2089_s26, %s2089_s26 }
 0xf5d   : > { %p2091_p8 = pnand %p2090_p6, %p2764_p11  ;;  %p2098_p3 = por %p2097_p1, %p2096_p0 }
 0xf5f   : > { %p2092_p12 = pneg %p2091_p8 }
 0xf61   : > { %p2099_p2 = pnand %p2098_p3, %p2092_p12 }
 0xf63   : > { %2102 = shalt.err (!%p2099_p2)
}
 0xf64   : > { %p2765_p9 = pmov %p2764_p11 }
 0xf66   : > { %1816 = dma.vmem_to_hbm [thread:$0]  (%p2765_p9), %s1528_s27, 128, %s2729_s14, [#allocation19]  }
 0xf67   : > { %p2766_p5 = pmov %p2765_p9 }
 0xf69   : > { %2142 = dma.done.wait (%p2766_p5), [#allocation19], 128   ;;  %p2767_p13 = pmov %p2766_p5 }
 0xf6b   : > { %2144 = vsyncadd (%p2767_p13), [#allocation19], 4294967168 }
 0xf6c PF: > { %s2768_s23 = sld [smem:[#allocation25_spill]]  ;;  %p1852_p10 = scmp.ge.s32.totalorder %s2163_s16, 2 }
 0xf6d   : > { %s2769_s29 = sld [smem:[#allocation29_spill]] }
 0xf72   : > { %s1543_s20 = sand.u32 1, %s2768_s23  }
 0xf73   : > { %p2770_p4 = scmp.ne.s32.totalorder %s2769_s29, 0  ;;  %s1544_s24 = scalar_lea.sflag [#allocation10], %s1543_s20 }
 0xf75   : > { %p1837_p7 = pnand %p1852_p10, %p2770_p4 }
 0xf77   : > { %p1838_p6 = pneg %p1837_p7 }
 0xf79   : > { %2146 = dma.done.wait (%p1838_p6), %s1544_s24, 128  }
 0xf7a   : > { %2148 = vsyncadd (%p1838_p6), %s1544_s24, 4294967168  ;;  %s2771_s16 = sld [smem:[#allocation27_spill]]  ;;  %s2774_s29 = smov %s2155_s30 }
 0xf7b   : > { %s2772_s22 = sld [smem:[#allocation26_spill]] }
 0xf7c   : > { %s2773_s15 = sld [smem:[#allocation28_spill]] }
 0xf80   : > { %p29_p11 = scmp.ge.s32.totalorder %s2771_s16, 7  }
 0xf81   : > { %s2775_s30 = smov %s2772_s22 }
 0xf82   :  { %31 = sbr.rel (!%p29_p11) target bundleno = 10 (0xa), region = 141 }
 0xf87   :  { %1549 = vsyncpa [#allocation9], 1 }
 0xf88   :  { %1551 = vsyncpa [#allocation9 + $0x1], 1 }
 0xf89   :  { %1552 = vsyncpa [#allocation12], 1 }
 0xf8a   :  { %1553 = vsyncpa [#allocation15], 1 }
 0xf8b   :  { %1554 = vsyncpa [#allocation10], 1 }
 0xf8c   :  { %1556 = vsyncpa [#allocation10 + $0x1], 1 }
 0xf8d   :  { %1557 = vsyncpa [#allocation19], 1 }

</bundles_post_ra>
